<compile_context>
chip_gen: v7x
topology: tpu7x:2x2x1
jax: 0.10.0
libtpu: 0.0.40
codegen_flags: <defaults>
</compile_context>

<pallas_src>
import functools
import math

import jax
import jax.numpy as jnp
from jax.experimental import pallas as pl
from jax.experimental.pallas import tpu as pltpu


def _round_up(x, m):
    return ((x + m - 1) // m) * m


def _policy_kernel(xh_ref, c0_ref, wg_ref, bg_ref, wh_ref, bh_ref,
                   mbias_ref, gumbel_ref,
                   policy_ref, misc_ref, hidden_ref, cell_ref,
                   *, action_dim):
    H = c0_ref.shape[-1]

    # ---- Fused LSTMCell gates: [x, h0] @ [W_ih ; W_hh] + (b_ih + b_hh) ----
    xh = xh_ref[...].astype(jnp.bfloat16)            # bf16 MXU operands
    gates = (jnp.dot(xh, wg_ref[...], preferred_element_type=jnp.float32)
             + bg_ref[...])

    # 128-lane-aligned gate slices (H == 128): offsets 0, H, 2H, 3H.
    i_g = jax.nn.sigmoid(gates[:, 0 * H:1 * H])
    f_g = jax.nn.sigmoid(gates[:, 1 * H:2 * H])
    g_g = jnp.tanh(gates[:, 2 * H:3 * H])
    o_g = jax.nn.sigmoid(gates[:, 3 * H:4 * H])
    c = f_g * c0_ref[...] + i_g * g_g
    h = o_g * jnp.tanh(c)
    hidden_ref[...] = h
    cell_ref[...] = c

    # ---- Fused action + value head: one (H, 128)-lane matmul ----
    head = (jnp.dot(h.astype(jnp.bfloat16), wh_ref[...],
                    preferred_element_type=jnp.float32) + bh_ref[...])

    Bp, AP = head.shape
    lane = jax.lax.broadcasted_iota(jnp.int32, (Bp, AP), 1)

    # Value lives in lane `action_dim` of the fused head output.
    value = jnp.sum(jnp.where(lane == action_dim, head, 0.0),
                    axis=-1, keepdims=True)

    # ---- Masked categorical (additive mask bias: 0 legal, finfo.min illegal) ----
    mbias = mbias_ref[...]
    legal = mbias == 0.0
    masked = head + mbias

    m = jnp.max(masked, axis=-1, keepdims=True)
    e = jnp.exp(masked - m)
    s = jnp.sum(e, axis=-1, keepdims=True)
    lse = m + jnp.log(s)
    norm_logits = masked - lse               # torch Categorical's normalized logits
    probs = e / s                            # 0 exactly on illegal / padding lanes
    policy_ref[...] = probs

    # ---- Gumbel-max sampling (equal in distribution to Categorical.sample()) ----
    z = norm_logits + gumbel_ref[...]
    zmax = jnp.max(z, axis=-1, keepdims=True)
    action = jnp.min(jnp.where(z == zmax, lane, AP), axis=-1, keepdims=True)

    # log_prob(action): gather normalized logit at the sampled lane.
    log_prob = jnp.sum(jnp.where(lane == action, norm_logits, 0.0),
                       axis=-1, keepdims=True)

    # Masked entropy (matches CategoricalMasked.entropy).
    p_log_p = jnp.where(legal, norm_logits * probs, 0.0)
    entropy = -jnp.sum(p_log_p, axis=-1, keepdims=True)

    # ---- Pack the four per-row scalars into one lane-dense (Bp, 128) slab ----
    action_f = action.astype(jnp.float32)
    misc_ref[...] = (jnp.where(lane == 0, action_f, 0.0)
                     + jnp.where(lane == 1, log_prob, 0.0)
                     + jnp.where(lane == 2, entropy, 0.0)
                     + jnp.where(lane == 3, value, 0.0))


def init_params(key, feature_dim, action_dim, lstm_hidden_dim):
    """PyTorch-style uniform init (nn.LSTMCell / nn.Linear defaults).

    Weights are stored pre-transposed as (in_features, out_features) so the
    kernel computes `x @ W`.
    """
    ks = jax.random.split(key, 8)
    kl = 1.0 / math.sqrt(lstm_hidden_dim)
    u = lambda k, shape, b: jax.random.uniform(k, shape, jnp.float32, -b, b)
    return dict(
        w_ih=u(ks[0], (feature_dim, 4 * lstm_hidden_dim), kl),
        w_hh=u(ks[1], (lstm_hidden_dim, 4 * lstm_hidden_dim), kl),
        b_ih=u(ks[2], (1, 4 * lstm_hidden_dim), kl),
        b_hh=u(ks[3], (1, 4 * lstm_hidden_dim), kl),
        w_a=u(ks[4], (lstm_hidden_dim, action_dim), kl),
        b_a=u(ks[5], (1, action_dim), kl),
        w_v=u(ks[6], (lstm_hidden_dim, 1), kl),
        b_v=u(ks[7], (1, 1), kl),
    )


def pack_params(params, action_dim):
    """One-time fuse + pad + bf16 cast of the parameters (outside the step).

      w_gates : (F+H, 4H) bf16  -- [W_ih ; W_hh] stacked along the K axis
      b_gates : (1, 4H)   f32   -- b_ih + b_hh
      w_head  : (H, AP)   bf16  -- lanes [0, A) action weights, lane A value
      b_head  : (1, AP)   f32
    """
    A = action_dim
    H = params["w_hh"].shape[0]
    AP = _round_up(A + 1, 128)

    w_gates = jnp.concatenate([params["w_ih"], params["w_hh"]],
                              axis=0).astype(jnp.bfloat16)
    b_gates = (params["b_ih"] + params["b_hh"]).astype(jnp.float32)

    w_head = jnp.zeros((H, AP), jnp.float32)
    w_head = w_head.at[:, :A].set(params["w_a"])
    w_head = w_head.at[:, A:A + 1].set(params["w_v"])
    w_head = w_head.astype(jnp.bfloat16)

    b_head = jnp.zeros((1, AP), jnp.float32)
    b_head = b_head.at[:, :A].set(params["b_a"])
    b_head = b_head.at[:, A:A + 1].set(params["b_v"])

    return dict(w_gates=w_gates, b_gates=b_gates, w_head=w_head, b_head=b_head)


@functools.partial(jax.jit, static_argnames=("action_dim",))
def shared_lstm_policy_forward(obs, packed, states_lstm, mask, gumbel,
                               *, action_dim):
    A = action_dim
    B = obs.shape[0]
    H = packed["w_head"].shape[0]
    AP = packed["w_head"].shape[1]
    Bp = _round_up(B, 8)                       # sublane-dense batch

    x = obs.reshape(B, -1).astype(jnp.float32)          # FlattenExtractor
    h0, c0 = states_lstm

    pad_rows = ((0, Bp - B), (0, 0))
    xh = jnp.concatenate([jnp.pad(x, pad_rows),
                          jnp.pad(h0.astype(jnp.float32), pad_rows)], axis=1)
    c0p = jnp.pad(c0.astype(jnp.float32), pad_rows)

    # Additive mask bias: 0 on legal lanes, finfo.min on illegal / padding lanes.
    # NOTE: if an entire row of `mask` is False the softmax degenerates to
    # uniform over all 128 lanes (same caveat as the PyTorch reference).
    neg = jnp.float32(jnp.finfo(jnp.float32).min)
    mask_p = jnp.pad(mask.astype(jnp.bool_), pad_rows, constant_values=True)
    legal = jnp.zeros((Bp, AP), jnp.bool_).at[:, :A].set(mask_p)
    mask_bias = jnp.where(legal, jnp.float32(0.0), neg)

    gumbel_p = jnp.pad(gumbel.astype(jnp.float32),
                       ((0, Bp - B), (0, AP - A)))

    vmem = pl.BlockSpec(memory_space=pltpu.MemorySpace.VMEM)
    out_shape = (
        jax.ShapeDtypeStruct((Bp, AP), jnp.float32),   # policy (lane padded)
        jax.ShapeDtypeStruct((Bp, AP), jnp.float32),   # packed scalars
        jax.ShapeDtypeStruct((Bp, H), jnp.float32),    # hidden
        jax.ShapeDtypeStruct((Bp, H), jnp.float32),    # cell
    )

    policy_p, misc, hidden_p, cell_p = pl.pallas_call(
        functools.partial(_policy_kernel, action_dim=A),
        out_shape=out_shape,
        in_specs=[vmem] * 8,
        out_specs=tuple([vmem] * 4),
    )(xh, c0p,
      packed["w_gates"], packed["b_gates"],
      packed["w_head"], packed["b_head"],
      mask_bias, gumbel_p)

    action = misc[:B, 0].astype(jnp.int32)
    log_prob = misc[:B, 1]
    entropy = misc[:B, 2]
    value = misc[:B, 3:4]
    policy = policy_p[:B, :A]
    hidden = hidden_p[:B]
    cell = cell_p[:B]
    return action, policy, log_prob, entropy, value, (hidden, cell)


if __name__ == "__main__":
    # Small shapes consistent with the module: obs (B, C, H, W) -> feature_dim.
    B, C, Himg, Wimg = 2, 4, 16, 16
    feature_dim = C * Himg * Wimg          # 1024
    action_dim = 6
    lstm_hidden_dim = 128                  # module default; 128-lane aligned gates

    key = jax.random.PRNGKey(0)
    k_obs, k_params, k_gumbel = jax.random.split(key, 3)

    obs = jax.random.normal(k_obs, (B, C, Himg, Wimg), jnp.float32)
    params = init_params(k_params, feature_dim, action_dim, lstm_hidden_dim)
    packed = pack_params(params, action_dim)

    # states_lstm=None path of the module: zeros.
    h0 = jnp.zeros((B, lstm_hidden_dim), jnp.float32)
    c0 = jnp.zeros((B, lstm_hidden_dim), jnp.float32)

    # Action mask (True = legal action).
    mask = jnp.array([[1, 1, 1, 1, 0, 1],
                      [1, 0, 1, 1, 1, 1]], dtype=jnp.bool_)

    # Gumbel noise for in-kernel categorical sampling (sampling randomness is glue).
    gumbel = jax.random.gumbel(k_gumbel, (B, action_dim), jnp.float32)

    action, policy, log_prob, entropy, value, (hidden, cell) = (
        shared_lstm_policy_forward(obs, packed, (h0, c0), mask, gumbel,
                                   action_dim=action_dim))

    jax.block_until_ready((action, policy, log_prob, entropy, value, hidden, cell))

    # Basic sanity checks.
    assert action.shape == (B,) and policy.shape == (B, action_dim)
    assert log_prob.shape == (B,) and entropy.shape == (B,)
    assert value.shape == (B, 1)
    assert hidden.shape == (B, lstm_hidden_dim) and cell.shape == (B, lstm_hidden_dim)
    assert bool(jnp.all(jnp.abs(policy.sum(axis=-1) - 1.0) < 1e-5))
    assert bool(jnp.all(policy[~mask] < 1e-30))          # masked actions ~0 prob
    assert bool(jnp.all((action >= 0) & (action < action_dim)))
    assert bool(jnp.all(mask[jnp.arange(B), action]))    # sampled actions are legal

    print("KERNEL_OK")
</pallas_src>

<mosaic_0001>
module attributes {stable_mosaic.version = 11 : i64} {
  func.func @_policy_kernel(%arg0: memref<8x1152xf32, #tpu.memory_space<vmem>>, %arg1: memref<8x128xf32, #tpu.memory_space<vmem>>, %arg2: memref<1152x512xbf16, #tpu.memory_space<vmem>>, %arg3: memref<1x512xf32, #tpu.memory_space<vmem>>, %arg4: memref<128x128xbf16, #tpu.memory_space<vmem>>, %arg5: memref<1x128xf32, #tpu.memory_space<vmem>>, %arg6: memref<8x128xf32, #tpu.memory_space<vmem>>, %arg7: memref<8x128xf32, #tpu.memory_space<vmem>>, %arg8: memref<8x128xf32, #tpu.memory_space<vmem>>, %arg9: memref<8x128xf32, #tpu.memory_space<vmem>>, %arg10: memref<8x128xf32, #tpu.memory_space<vmem>>, %arg11: memref<8x128xf32, #tpu.memory_space<vmem>>) attributes {dimension_semantics = [], scalar_prefetch = 0 : i64, scratch_operands = 0 : i64, tpu.core_type = #tpu.core_type<tc>} {
    %c0 = arith.constant 0 : index
    %c0_0 = arith.constant 0 : index
    %0 = vector.load %arg0[%c0, %c0_0] : memref<8x1152xf32, #tpu.memory_space<vmem>>, vector<8x1152xf32>
    %1 = arith.truncf %0 : vector<8x1152xf32> to vector<8x1152xbf16>
    %c0_1 = arith.constant 0 : index
    %c0_2 = arith.constant 0 : index
    %2 = vector.load %arg2[%c0_1, %c0_2] : memref<1152x512xbf16, #tpu.memory_space<vmem>>, vector<1152x512xbf16>
    %cst = arith.constant dense<0.000000e+00> : vector<8x512xf32>
    %3 = tpu.matmul %1, %2, %cst {dimension_numbers = #tpu.dot_dimension_numbers<[1], [0], [0], [1], [0, 0, 1, 1], [], []>} : vector<8x1152xbf16>, vector<1152x512xbf16>, vector<8x512xf32> -> vector<8x512xf32>
    %c0_3 = arith.constant 0 : index
    %c0_4 = arith.constant 0 : index
    %4 = vector.load %arg3[%c0_3, %c0_4] : memref<1x512xf32, #tpu.memory_space<vmem>>, vector<1x512xf32>
    %5 = vector.broadcast %4 : vector<1x512xf32> to vector<8x512xf32>
    %6 = arith.addf %3, %5 : vector<8x512xf32>
    %7 = vector.extract_strided_slice %6 {offsets = [0, 0], sizes = [8, 128], strides = [1, 1]} : vector<8x512xf32> to vector<8x128xf32>
    %8 = arith.negf %7 : vector<8x128xf32>
    %9 = math.exp %8 : vector<8x128xf32>
    %cst_5 = arith.constant 1.000000e+00 : f32
    %10 = vector.broadcast %cst_5 : f32 to vector<8x128xf32>
    %11 = arith.addf %10, %9 : vector<8x128xf32>
    %12 = arith.divf %10, %11 : vector<8x128xf32>
    %13 = vector.extract_strided_slice %6 {offsets = [0, 128], sizes = [8, 128], strides = [1, 1]} : vector<8x512xf32> to vector<8x128xf32>
    %14 = arith.negf %13 : vector<8x128xf32>
    %15 = math.exp %14 : vector<8x128xf32>
    %cst_6 = arith.constant 1.000000e+00 : f32
    %16 = vector.broadcast %cst_6 : f32 to vector<8x128xf32>
    %17 = arith.addf %16, %15 : vector<8x128xf32>
    %18 = arith.divf %16, %17 : vector<8x128xf32>
    %19 = vector.extract_strided_slice %6 {offsets = [0, 256], sizes = [8, 128], strides = [1, 1]} : vector<8x512xf32> to vector<8x128xf32>
    %20 = math.tanh %19 : vector<8x128xf32>
    %21 = vector.extract_strided_slice %6 {offsets = [0, 384], sizes = [8, 128], strides = [1, 1]} : vector<8x512xf32> to vector<8x128xf32>
    %22 = arith.negf %21 : vector<8x128xf32>
    %23 = math.exp %22 : vector<8x128xf32>
    %cst_7 = arith.constant 1.000000e+00 : f32
    %24 = vector.broadcast %cst_7 : f32 to vector<8x128xf32>
    %25 = arith.addf %24, %23 : vector<8x128xf32>
    %26 = arith.divf %24, %25 : vector<8x128xf32>
    %c0_8 = arith.constant 0 : index
    %c0_9 = arith.constant 0 : index
    %27 = vector.load %arg1[%c0_8, %c0_9] : memref<8x128xf32, #tpu.memory_space<vmem>>, vector<8x128xf32>
    %28 = arith.mulf %18, %27 : vector<8x128xf32>
    %29 = arith.mulf %12, %20 : vector<8x128xf32>
    %30 = arith.addf %28, %29 : vector<8x128xf32>
    %31 = math.tanh %30 : vector<8x128xf32>
    %32 = arith.mulf %26, %31 : vector<8x128xf32>
    %c0_10 = arith.constant 0 : index
    %c0_11 = arith.constant 0 : index
    %33 = vector.load %arg10[%c0_10, %c0_11] : memref<8x128xf32, #tpu.memory_space<vmem>>, vector<8x128xf32>
    tpu.vector_store %arg10[%c0_10, %c0_11], %32 {strides = array<i32>} : memref<8x128xf32, #tpu.memory_space<vmem>>, vector<8x128xf32>,
    %c0_12 = arith.constant 0 : index
    %c0_13 = arith.constant 0 : index
    %34 = vector.load %arg11[%c0_12, %c0_13] : memref<8x128xf32, #tpu.memory_space<vmem>>, vector<8x128xf32>
    tpu.vector_store %arg11[%c0_12, %c0_13], %30 {strides = array<i32>} : memref<8x128xf32, #tpu.memory_space<vmem>>, vector<8x128xf32>,
    %35 = arith.truncf %32 : vector<8x128xf32> to vector<8x128xbf16>
    %c0_14 = arith.constant 0 : index
    %c0_15 = arith.constant 0 : index
    %36 = vector.load %arg4[%c0_14, %c0_15] : memref<128x128xbf16, #tpu.memory_space<vmem>>, vector<128x128xbf16>
    %cst_16 = arith.constant dense<0.000000e+00> : vector<8x128xf32>
    %37 = tpu.matmul %35, %36, %cst_16 {dimension_numbers = #tpu.dot_dimension_numbers<[1], [0], [0], [1], [0, 0, 1, 1], [], []>} : vector<8x128xbf16>, vector<128x128xbf16>, vector<8x128xf32> -> vector<8x128xf32>
    %c0_17 = arith.constant 0 : index
    %c0_18 = arith.constant 0 : index
    %38 = vector.load %arg5[%c0_17, %c0_18] : memref<1x128xf32, #tpu.memory_space<vmem>>, vector<1x128xf32>
    %39 = vector.broadcast %38 : vector<1x128xf32> to vector<8x128xf32>
    %40 = arith.addf %37, %39 : vector<8x128xf32>
    %41 = tpu.iota {dimensions = array<i32: 1>} : vector<8x128xi32>
    %c6_i32 = arith.constant 6 : i32
    %42 = vector.broadcast %c6_i32 : i32 to vector<8x128xi32>
    %43 = arith.cmpi eq, %41, %42 : vector<8x128xi32>
    %cst_19 = arith.constant 0.000000e+00 : f32
    %44 = vector.broadcast %cst_19 : f32 to vector<8x128xf32>
    %45 = arith.select %43, %40, %44 : vector<8x128xi1>, vector<8x128xf32>
    %cst_20 = arith.constant dense<0.000000e+00> : vector<8xf32>
    %46 = vector.multi_reduction <add>, %45, %cst_20 [1] : vector<8x128xf32> to vector<8xf32>
    %47 = vector.shape_cast %46 : vector<8xf32> to vector<8x1xf32>
    %c0_21 = arith.constant 0 : index
    %c0_22 = arith.constant 0 : index
    %48 = vector.load %arg6[%c0_21, %c0_22] : memref<8x128xf32, #tpu.memory_space<vmem>>, vector<8x128xf32>
    %cst_23 = arith.constant 0.000000e+00 : f32
    %49 = vector.broadcast %cst_23 : f32 to vector<8x128xf32>
    %50 = arith.cmpf oeq, %48, %49 : vector<8x128xf32>
    %51 = arith.addf %40, %48 : vector<8x128xf32>
    %cst_24 = arith.constant dense<0xFF800000> : vector<8xf32>
    %52 = vector.multi_reduction <maximumf>, %51, %cst_24 [1] : vector<8x128xf32> to vector<8xf32>
    %53 = vector.shape_cast %52 : vector<8xf32> to vector<8x1xf32>
    %54 = vector.broadcast %53 : vector<8x1xf32> to vector<8x128xf32>
    %55 = arith.subf %51, %54 : vector<8x128xf32>
    %56 = math.exp %55 : vector<8x128xf32>
    %cst_25 = arith.constant dense<0.000000e+00> : vector<8xf32>
    %57 = vector.multi_reduction <add>, %56, %cst_25 [1] : vector<8x128xf32> to vector<8xf32>
    %58 = vector.shape_cast %57 : vector<8xf32> to vector<8x1xf32>
    %59 = math.log %58 : vector<8x1xf32>
    %60 = arith.addf %53, %59 : vector<8x1xf32>
    %61 = vector.broadcast %60 : vector<8x1xf32> to vector<8x128xf32>
    %62 = arith.subf %51, %61 : vector<8x128xf32>
    %63 = vector.broadcast %58 : vector<8x1xf32> to vector<8x128xf32>
    %64 = arith.divf %56, %63 : vector<8x128xf32>
    %c0_26 = arith.constant 0 : index
    %c0_27 = arith.constant 0 : index
    %65 = vector.load %arg8[%c0_26, %c0_27] : memref<8x128xf32, #tpu.memory_space<vmem>>, vector<8x128xf32>
    tpu.vector_store %arg8[%c0_26, %c0_27], %64 {strides = array<i32>} : memref<8x128xf32, #tpu.memory_space<vmem>>, vector<8x128xf32>,
    %c0_28 = arith.constant 0 : index
    %c0_29 = arith.constant 0 : index
    %66 = vector.load %arg7[%c0_28, %c0_29] : memref<8x128xf32, #tpu.memory_space<vmem>>, vector<8x128xf32>
    %67 = arith.addf %62, %66 : vector<8x128xf32>
    %cst_30 = arith.constant dense<0xFF800000> : vector<8xf32>
    %68 = vector.multi_reduction <maximumf>, %67, %cst_30 [1] : vector<8x128xf32> to vector<8xf32>
    %69 = vector.shape_cast %68 : vector<8xf32> to vector<8x1xf32>
    %70 = vector.broadcast %69 : vector<8x1xf32> to vector<8x128xf32>
    %71 = arith.cmpf oeq, %67, %70 : vector<8x128xf32>
    %c128_i32 = arith.constant 128 : i32
    %72 = vector.broadcast %c128_i32 : i32 to vector<8x128xi32>
    %73 = arith.select %71, %41, %72 : vector<8x128xi1>, vector<8x128xi32>
    %cst_31 = arith.constant dense<2147483647> : vector<8xi32>
    %74 = vector.multi_reduction <minsi>, %73, %cst_31 [1] : vector<8x128xi32> to vector<8xi32>
    %75 = vector.shape_cast %74 : vector<8xi32> to vector<8x1xi32>
    %76 = vector.broadcast %75 : vector<8x1xi32> to vector<8x128xi32>
    %77 = arith.cmpi eq, %41, %76 : vector<8x128xi32>
    %cst_32 = arith.constant 0.000000e+00 : f32
    %78 = vector.broadcast %cst_32 : f32 to vector<8x128xf32>
    %79 = arith.select %77, %62, %78 : vector<8x128xi1>, vector<8x128xf32>
    %cst_33 = arith.constant dense<0.000000e+00> : vector<8xf32>
    %80 = vector.multi_reduction <add>, %79, %cst_33 [1] : vector<8x128xf32> to vector<8xf32>
    %81 = vector.shape_cast %80 : vector<8xf32> to vector<8x1xf32>
    %82 = arith.mulf %62, %64 : vector<8x128xf32>
    %cst_34 = arith.constant 0.000000e+00 : f32
    %83 = vector.broadcast %cst_34 : f32 to vector<8x128xf32>
    %84 = arith.select %50, %82, %83 : vector<8x128xi1>, vector<8x128xf32>
    %cst_35 = arith.constant dense<0.000000e+00> : vector<8xf32>
    %85 = vector.multi_reduction <add>, %84, %cst_35 [1] : vector<8x128xf32> to vector<8xf32>
    %86 = vector.shape_cast %85 : vector<8xf32> to vector<8x1xf32>
    %cst_36 = arith.constant 0.000000e+00 : f32
    %87 = vector.broadcast %cst_36 : f32 to vector<8x1xf32>
    %88 = arith.subf %87, %86 : vector<8x1xf32>
    %89 = arith.sitofp %75 : vector<8x1xi32> to vector<8x1xf32>
    %c0_i32 = arith.constant 0 : i32
    %90 = vector.broadcast %c0_i32 : i32 to vector<8x128xi32>
    %91 = arith.cmpi eq, %41, %90 : vector<8x128xi32>
    %cst_37 = arith.constant 0.000000e+00 : f32
    %92 = vector.shape_cast %89 : vector<8x1xf32> to vector<8x1xf32>
    %93 = vector.broadcast %92 : vector<8x1xf32> to vector<8x128xf32>
    %94 = vector.broadcast %cst_37 : f32 to vector<8x128xf32>
    %95 = arith.select %91, %93, %94 : vector<8x128xi1>, vector<8x128xf32>
    %c1_i32 = arith.constant 1 : i32
    %96 = vector.broadcast %c1_i32 : i32 to vector<8x128xi32>
    %97 = arith.cmpi eq, %41, %96 : vector<8x128xi32>
    %cst_38 = arith.constant 0.000000e+00 : f32
    %98 = vector.shape_cast %81 : vector<8x1xf32> to vector<8x1xf32>
    %99 = vector.broadcast %98 : vector<8x1xf32> to vector<8x128xf32>
    %100 = vector.broadcast %cst_38 : f32 to vector<8x128xf32>
    %101 = arith.select %97, %99, %100 : vector<8x128xi1>, vector<8x128xf32>
    %102 = arith.addf %95, %101 : vector<8x128xf32>
    %c2_i32 = arith.constant 2 : i32
    %103 = vector.broadcast %c2_i32 : i32 to vector<8x128xi32>
    %104 = arith.cmpi eq, %41, %103 : vector<8x128xi32>
    %cst_39 = arith.constant 0.000000e+00 : f32
    %105 = vector.shape_cast %88 : vector<8x1xf32> to vector<8x1xf32>
    %106 = vector.broadcast %105 : vector<8x1xf32> to vector<8x128xf32>
    %107 = vector.broadcast %cst_39 : f32 to vector<8x128xf32>
    %108 = arith.select %104, %106, %107 : vector<8x128xi1>, vector<8x128xf32>
    %109 = arith.addf %102, %108 : vector<8x128xf32>
    %c3_i32 = arith.constant 3 : i32
    %110 = vector.broadcast %c3_i32 : i32 to vector<8x128xi32>
    %111 = arith.cmpi eq, %41, %110 : vector<8x128xi32>
    %cst_40 = arith.constant 0.000000e+00 : f32
    %112 = vector.shape_cast %47 : vector<8x1xf32> to vector<8x1xf32>
    %113 = vector.broadcast %112 : vector<8x1xf32> to vector<8x128xf32>
    %114 = vector.broadcast %cst_40 : f32 to vector<8x128xf32>
    %115 = arith.select %111, %113, %114 : vector<8x128xi1>, vector<8x128xf32>
    %116 = arith.addf %109, %115 : vector<8x128xf32>
    %c0_41 = arith.constant 0 : index
    %c0_42 = arith.constant 0 : index
    %117 = vector.load %arg9[%c0_41, %c0_42] : memref<8x128xf32, #tpu.memory_space<vmem>>, vector<8x128xf32>
    tpu.vector_store %arg9[%c0_41, %c0_42], %116 {strides = array<i32>} : memref<8x128xf32, #tpu.memory_space<vmem>>, vector<8x128xf32>,
    return
  }
}

</mosaic_0001>

<bundles_post_ra>
// kernel: shared_lstm_policy_forward.1
= control target key start
LH: loop header
LB: loop body
LE: loop exit
PB: predicated region body
PF: predicated region fallthrough
CT: control target
= control target key end

     0   :  { %17 = vsyncpa [#allocation3], 0  ;;  %s3594_s0 = inlined_call_operand.vmem [shape: f32[8,1152], index: 0, kind: input, shape index: {}]   ;;  %s3595_s1 = inlined_call_operand.vmem [shape: f32[8,128], index: 1, kind: input, shape index: {}]   ;;  %s3596_s2 = inlined_call_operand.hbm [shape: bf16[1152,512], index: 2, kind: input, shape index: {}]   ;;  %s3597_s3 = inlined_call_operand.hbm [shape: f32[1,512], index: 3, kind: input, shape index: {}]   ;;  %s3598_s4 = inlined_call_operand.hbm [shape: bf16[128,128], index: 4, kind: input, shape index: {}]   ;;  %s3599_s5 = inlined_call_operand.hbm [shape: f32[1,128], index: 5, kind: input, shape index: {}]   ;;  %s3600_s6 = inlined_call_operand.vmem [shape: f32[8,128], index: 6, kind: input, shape index: {}]   ;;  %s3601_s7 = inlined_call_operand.vmem [shape: f32[8,128], index: 7, kind: input, shape index: {}]   ;;  %s3602_s8 = inlined_call_operand.vmem [shape: f32[8,128], index: 8, kind: output, shape index: {0}]   ;;  %s3603_s9 = inlined_call_operand.vmem [shape: f32[8,128], index: 9, kind: output, shape index: {1}]   ;;  %s3604_s10 = inlined_call_operand.vmem [shape: f32[8,128], index: 10, kind: output, shape index: {2}]   ;;  %s3605_s11 = inlined_call_operand.vmem [shape: f32[8,128], index: 11, kind: output, shape index: {3}]  }
   0x1   :  { %18 = vsyncpa [#allocation5], 0 }
   0x2   :  { %19 = vsyncpa [#allocation8], 0  ;;  %s3418_s17 = smov [#allocation4]   ;;  %s3419_s19 = smov [#allocation2]  }
   0x3   :  { %s42_s18 = sshll.u32 %s3418_s17, 4  ;;  %s29_s20 = sshll.u32 %s3419_s19, 4  ;;  %s43_s18 = int_to_ptr.vmem [resolvable:$true] %s42_s18  ;;  %s3489_s20 = int_to_ptr.vmem [resolvable:$true] %s29_s20 }
   0x4   :  { %s3324_s23 = scalar_lea.hbm %s3597_s3, 64 }
   0x5   :  { %p3325_p0 = scmp.ne.s32.totalorder %s3597_s3, %s3324_s23  ;;  %p3328_p1 = scmp.lt.u32.totalorder %s3324_s23, %s3597_s3 }
   0x7   :  { %p3330_p2 = pnand %p3328_p1, %p3325_p0 }
   0x9   :  { %3333 = shalt.err (!%p3330_p2)
}
   0xa   :  { %s3334_s28 = scalar_lea.vmem %s43_s18, 64  ;;  %p3339_p4 = scmp.lt.s32.totalorder %s43_s18, %s43_s18 }
   0xb   :  { %p3335_p3 = scmp.ne.s32.totalorder %s43_s18, %s3334_s28  ;;  %p3340_p5 = scmp.lt.s32.totalorder %s3334_s28, %s3334_s28 }
   0xd   :  { %p3341_p6 = por %p3340_p5, %p3339_p4 }
   0xf   :  { %p3342_p7 = pnand %p3341_p6, %p3335_p3 }
  0x11   :  { %3345 = shalt.err (!%p3342_p7)
}
  0x12   :  { %45 = dma.hbm_to_vmem [thread:$0]  %s3597_s3, 64, %s43_s18, [#allocation5]  }
  0x13   :  { %s3346_s14 = scalar_lea.hbm %s3596_s2, 36864 }
  0x14   :  { %p3347_p8 = scmp.ne.s32.totalorder %s3596_s2, %s3346_s14  ;;  %p3350_p9 = scmp.lt.u32.totalorder %s3346_s14, %s3596_s2 }
  0x16   :  { %p3352_p10 = pnand %p3350_p9, %p3347_p8 }
  0x18   :  { %3355 = shalt.err (!%p3352_p10)
}
  0x19   :  { %s3356_s21 = scalar_lea.vmem %s3489_s20, 36864  ;;  %p3361_p12 = scmp.lt.s32.totalorder %s3489_s20, %s3489_s20 }
  0x1a   :  { %p3357_p11 = scmp.ne.s32.totalorder %s3489_s20, %s3356_s21  ;;  %p3362_p13 = scmp.lt.s32.totalorder %s3356_s21, %s3356_s21 }
  0x1c   :  { %p3363_p0 = por %p3362_p13, %p3361_p12 }
  0x1e   :  { %p3364_p1 = pnand %p3363_p0, %p3357_p11 }
  0x20   :  { %3367 = shalt.err (!%p3364_p1)
}
  0x21   :  { %s3420_s3 = smov 256   ;;  %s3421_s18 = smov 16  }
  0x22   :  { %35 = dma.hbm_to_vmem [thread:$0]  %s3596_s2, 36864, %s3489_s20, [#allocation3], %s3420_s3, %s3420_s3, %s3421_s18  }
  0x23   :  { %s3422_s24 = smov [#allocation6]   ;;  %s3368_s28 = scalar_lea.hbm %s3598_s4, 1024 }
  0x24   :  { %s51_s25 = sshll.u32 %s3422_s24, 4  ;;  %p3369_p2 = scmp.ne.s32.totalorder %s3598_s4, %s3368_s28  ;;  %s52_s25 = int_to_ptr.vmem [resolvable:$true] %s51_s25 }
  0x25   :  { %p3372_p3 = scmp.lt.u32.totalorder %s3368_s28, %s3598_s4 }
  0x27   :  { %p3374_p4 = pnand %p3372_p3, %p3369_p2 }
  0x29   :  { %3377 = shalt.err (!%p3374_p4)
}
  0x2a   :  { %s3378_s14 = scalar_lea.vmem %s52_s25, 1024  ;;  %p3383_p6 = scmp.lt.s32.totalorder %s52_s25, %s52_s25 }
  0x2b   :  { %p3379_p5 = scmp.ne.s32.totalorder %s52_s25, %s3378_s14  ;;  %p3384_p7 = scmp.lt.s32.totalorder %s3378_s14, %s3378_s14 }
  0x2d   :  { %p3385_p8 = por %p3384_p7, %p3383_p6 }
  0x2f   :  { %p3386_p9 = pnand %p3385_p8, %p3379_p5 }
  0x31   :  { %3389 = shalt.err (!%p3386_p9)
}
  0x32   :  { %s3423_s2 = smov 64   ;;  %s3424_s20 = smov 4  }
  0x33   :  { %57 = dma.hbm_to_vmem [thread:$0]  %s3598_s4, 1024, %s52_s25, [#allocation5], %s3423_s2, %s3423_s2, %s3424_s20  }
  0x34   :  { %s3425_s17 = smov [#allocation7]   ;;  %s3390_s18 = scalar_lea.hbm %s3599_s5, 16 }
  0x35   :  { %s64_s19 = sshll.u32 %s3425_s17, 4  ;;  %p3391_p10 = scmp.ne.s32.totalorder %s3599_s5, %s3390_s18  ;;  %s65_s19 = int_to_ptr.vmem [resolvable:$true] %s64_s19 }
  0x36   :  { %p3394_p11 = scmp.lt.u32.totalorder %s3390_s18, %s3599_s5 }
  0x38   :  { %p3396_p12 = pnand %p3394_p11, %p3391_p10 }
  0x3a   :  { %3399 = shalt.err (!%p3396_p12)
}
  0x3b   :  { %s3400_s27 = scalar_lea.vmem %s65_s19, 16  ;;  %s3404_s4 = scalar_lea.vmem %s65_s19, 32 }
  0x3c   :  { %p3401_p13 = scmp.ne.s32.totalorder %s65_s19, %s3400_s27  ;;  %p3405_p0 = scmp.lt.s32.totalorder %s65_s19, %s65_s19 }
  0x3d   :  { %p3406_p1 = scmp.lt.s32.totalorder %s3404_s4, %s3400_s27 }
  0x3f   :  { %p3407_p2 = por %p3406_p1, %p3405_p0 }
  0x41   :  { %p3408_p3 = pnand %p3407_p2, %p3401_p13 }
  0x43   :  { %3411 = shalt.err (!%p3408_p3)
}
  0x44   :  { %67 = dma.hbm_to_vmem [thread:$0]  %s3599_s5, 16, %s65_s19, [#allocation8]  }
  0x45   :  { %3412 = dma.done.wait [#allocation3], 36864  }
  0x46   :  { %3413 = vsyncadd [#allocation3], 4294930432 }
  0x47   :  { %3414 = dma.done.wait [#allocation5], 1088  }
  0x48   :  { %3415 = vsyncadd [#allocation5], 4294966208 }
  0x49   :  { %3416 = dma.done.wait [#allocation8], 16  }
  0x4a   :  { %3417 = vsyncadd [#allocation8], 4294967280  ;;  %v2862_v0 = vld [vmem:[#allocation2 + $0x4] ss:$16 sps:$4 sm:$0xff]   ;;  %v2864_v1 = vld [vmem:[#allocation2 + $0xc] ss:$16 sps:$4 sm:$0xff]  }
  0x4b   :  { %1853 = vmatprep.subr.bf16.mxu0 %v2862_v0  ;;  %v2866_v2 = vld [vmem:[#allocation2] ss:$16 sps:$4 sm:$0xff]   ;;  %v2867_v3 = vld [vmem:[#allocation2 + $0x8] ss:$16 sps:$4 sm:$0xff]   ;;  %2058 = vmatprep.subr.bf16.mxu1 %v2864_v1  ;;  %v2868_v4 = vld [vmem:[#allocation2 + $0x24] ss:$16 sps:$4 sm:$0xff]  }
  0x4c   :  { %1854 = vmatpush1.bf16.msra.mxu0 %v2866_v2  ;;  %2059 = vmatpush1.bf16.msra.mxu1 %v2867_v3  ;;  %v2870_v5 = vld [vmem:[#allocation2 + $0x2c] ss:$16 sps:$4 sm:$0xff]   ;;  %v2872_v6 = vld [vmem:[#allocation2 + $0x20] ss:$16 sps:$4 sm:$0xff]   ;;  %v2873_v7 = vld [vmem:[#allocation2 + $0x28] ss:$16 sps:$4 sm:$0xff]  }
  0x4d   :  { %1855 = vmatprep.subr.bf16.mxu0 %v2868_v4  ;;  %2060 = vmatprep.subr.bf16.mxu1 %v2870_v5  ;;  %v2874_v8 = vld [vmem:[#allocation2 + $0x44] ss:$16 sps:$4 sm:$0xff]   ;;  %v2876_v9 = vld [vmem:[#allocation2 + $0x4c] ss:$16 sps:$4 sm:$0xff]   ;;  %v2878_v10 = vld [vmem:[#allocation2 + $0x40] ss:$16 sps:$4 sm:$0xff]  }
  0x4e   :  { %v2879_v11 = vld [vmem:[#allocation2 + $0x48] ss:$16 sps:$4 sm:$0xff]   ;;  %v2880_v12 = vld [vmem:[#allocation2 + $0x64] ss:$16 sps:$4 sm:$0xff]   ;;  %v2882_v13 = vld [vmem:[#allocation2 + $0x6c] ss:$16 sps:$4 sm:$0xff]  }
  0x4f   :  { %v2884_v14 = vld [vmem:[#allocation2 + $0x60] ss:$16 sps:$4 sm:$0xff]   ;;  %v2885_v15 = vld [vmem:[#allocation2 + $0x68] ss:$16 sps:$4 sm:$0xff]   ;;  %v2886_v16 = vld [vmem:[#allocation2 + $0x84] ss:$16 sps:$4 sm:$0xff]  }
  0x50   :  { %1856 = vmatpush1.bf16.msra.mxu0 %v2872_v6  ;;  %2061 = vmatpush1.bf16.msra.mxu1 %v2873_v7  ;;  %v2888_v17 = vld [vmem:[#allocation2 + $0x8c] ss:$16 sps:$4 sm:$0xff]   ;;  %v2890_v18 = vld [vmem:[#allocation2 + $0x80] ss:$16 sps:$4 sm:$0xff]   ;;  %v2891_v19 = vld [vmem:[#allocation2 + $0x88] ss:$16 sps:$4 sm:$0xff]  }
  0x51   :  { %1857 = vmatprep.subr.bf16.mxu0 %v2874_v8  ;;  %2062 = vmatprep.subr.bf16.mxu1 %v2876_v9  ;;  %v2892_v20 = vld [vmem:[#allocation2 + $0xa4] ss:$16 sps:$4 sm:$0xff]   ;;  %v2894_v21 = vld [vmem:[#allocation2 + $0xac] ss:$16 sps:$4 sm:$0xff]   ;;  %v2896_v22 = vld [vmem:[#allocation2 + $0xa0] ss:$16 sps:$4 sm:$0xff]  }
  0x52   :  { %v2897_v23 = vld [vmem:[#allocation2 + $0xa8] ss:$16 sps:$4 sm:$0xff]   ;;  %v2898_v24 = vld [vmem:[#allocation2 + $0xc4] ss:$16 sps:$4 sm:$0xff]   ;;  %v2900_v25 = vld [vmem:[#allocation2 + $0xcc] ss:$16 sps:$4 sm:$0xff]  }
  0x53   :  { %v2902_v26 = vld [vmem:[#allocation2 + $0xc0] ss:$16 sps:$4 sm:$0xff]   ;;  %v2903_v27 = vld [vmem:[#allocation2 + $0xc8] ss:$16 sps:$4 sm:$0xff]   ;;  %v2904_v28 = vld [vmem:[#allocation2 + $0xe4] ss:$16 sps:$4 sm:$0xff]  }
  0x54   :  { %1858 = vmatpush1.bf16.msra.mxu0 %v2878_v10  ;;  %2063 = vmatpush1.bf16.msra.mxu1 %v2879_v11  ;;  %v2906_v29 = vld [vmem:[#allocation2 + $0xec] ss:$16 sps:$4 sm:$0xff]   ;;  %v2908_v30 = vld [vmem:[#allocation2 + $0xe0] ss:$16 sps:$4 sm:$0xff]   ;;  %v2909_v31 = vld [vmem:[#allocation2 + $0xe8] ss:$16 sps:$4 sm:$0xff]  }
  0x55   :  { %1859 = vmatprep.subr.bf16.mxu0 %v2880_v12  ;;  %2064 = vmatprep.subr.bf16.mxu1 %v2882_v13  ;;  %v2910_v32 = vld [vmem:[#allocation2 + $0x104] ss:$16 sps:$4 sm:$0xff]   ;;  %v2912_v33 = vld [vmem:[#allocation2 + $0x10c] ss:$16 sps:$4 sm:$0xff]   ;;  %v2914_v34 = vld [vmem:[#allocation2 + $0x100] ss:$16 sps:$4 sm:$0xff]  }
  0x56   :  { %v2915_v35 = vld [vmem:[#allocation2 + $0x108] ss:$16 sps:$4 sm:$0xff]   ;;  %v2916_v36 = vld [vmem:[#allocation2 + $0x124] ss:$16 sps:$4 sm:$0xff]   ;;  %v2918_v37 = vld [vmem:[#allocation2 + $0x12c] ss:$16 sps:$4 sm:$0xff]  }
  0x57   :  { %v2920_v38 = vld [vmem:[#allocation2 + $0x120] ss:$16 sps:$4 sm:$0xff]   ;;  %v2921_v39 = vld [vmem:[#allocation2 + $0x128] ss:$16 sps:$4 sm:$0xff]   ;;  %v2922_v40 = vld [vmem:[#allocation2 + $0x144] ss:$16 sps:$4 sm:$0xff]  }
  0x58   :  { %1860 = vmatpush1.bf16.msra.mxu0 %v2884_v14  ;;  %2065 = vmatpush1.bf16.msra.mxu1 %v2885_v15  ;;  %v2924_v41 = vld [vmem:[#allocation2 + $0x14c] ss:$16 sps:$4 sm:$0xff]   ;;  %v2926_v42 = vld [vmem:[#allocation2 + $0x140] ss:$16 sps:$4 sm:$0xff]   ;;  %v2927_v43 = vld [vmem:[#allocation2 + $0x148] ss:$16 sps:$4 sm:$0xff]  }
  0x59   :  { %1861 = vmatprep.subr.bf16.mxu0 %v2886_v16  ;;  %2066 = vmatprep.subr.bf16.mxu1 %v2888_v17  ;;  %v2928_v44 = vld [vmem:[#allocation2 + $0x164] ss:$16 sps:$4 sm:$0xff]   ;;  %v2930_v45 = vld [vmem:[#allocation2 + $0x16c] ss:$16 sps:$4 sm:$0xff]   ;;  %v2932_v47 = vld [vmem:[#allocation2 + $0x160] ss:$16 sps:$4 sm:$0xff]  }
  0x5a   :  { %v86_v46 = vld [vmem:[%s3594_s0 + $0x8] sm:$0xff]  ;;  %v2934_v50 = vld [vmem:[#allocation2 + $0x184] ss:$16 sps:$4 sm:$0xff]   ;;  %v2938_v52 = vld [vmem:[#allocation2 + $0x180] ss:$16 sps:$4 sm:$0xff]   ;;  %vm3428_vm0 = vmmov 0  }
  0x5b   :  { %v95_v48 = vpack.c.bf16 %v86_v46, %v86_v46  ;;  %v2933_v49 = vld [vmem:[#allocation2 + $0x168] ss:$16 sps:$4 sm:$0xff]   ;;  %v2936_v51 = vld [vmem:[#allocation2 + $0x18c] ss:$16 sps:$4 sm:$0xff]   ;;  %v2940_v54 = vld [vmem:[#allocation2 + $0x1a4] ss:$16 sps:$4 sm:$0xff]  }
  0x5c   :  { %1862 = vmatpush1.bf16.msra.mxu0 %v2890_v18  ;;  %2067 = vmatpush1.bf16.msra.mxu1 %v2891_v19  ;;  %v2939_v53 = vld [vmem:[#allocation2 + $0x188] ss:$16 sps:$4 sm:$0xff]   ;;  %v2942_v55 = vld [vmem:[#allocation2 + $0x1ac] ss:$16 sps:$4 sm:$0xff]   ;;  %v2944_v56 = vld [vmem:[#allocation2 + $0x1a0] ss:$16 sps:$4 sm:$0xff]  }
  0x5d   :  { %1863 = vmatprep.subr.bf16.mxu0 %v2892_v20  ;;  %2068 = vmatprep.subr.bf16.mxu1 %v2894_v21  ;;  %v2945_v57 = vld [vmem:[#allocation2 + $0x1a8] ss:$16 sps:$4 sm:$0xff]   ;;  %v2946_v58 = vld [vmem:[#allocation2 + $0x1c4] ss:$16 sps:$4 sm:$0xff]   ;;  %v2948_v59 = vld [vmem:[#allocation2 + $0x1cc] ss:$16 sps:$4 sm:$0xff]  }
  0x5e   :  { %1885 = vmatprep.mubr.bf16.mxu0 %v95_v48  ;;  %2090 = vmatprep.mubr.bf16.mxu1 %v95_v48  ;;  %v2950_v60 = vld [vmem:[#allocation2 + $0x1c0] ss:$16 sps:$4 sm:$0xff]   ;;  %v2951_v61 = vld [vmem:[#allocation2 + $0x1c8] ss:$16 sps:$4 sm:$0xff]   ;;  %v2952_v62 = vld [vmem:[#allocation2 + $0x1e4] ss:$16 sps:$4 sm:$0xff]  }
  0x5f   :  { %v2954_v63 = vld [vmem:[#allocation2 + $0x1ec] ss:$16 sps:$4 sm:$0xff]   ;;  %v2956_v0 = vld [vmem:[#allocation2 + $0x1e0] ss:$16 sps:$4 sm:$0xff]   ;;  %v2957_v1 = vld [vmem:[#allocation2 + $0x1e8] ss:$16 sps:$4 sm:$0xff]  }
  0x60   :  { %1864 = vmatpush1.bf16.msra.mxu0 %v2896_v22  ;;  %2069 = vmatpush1.bf16.msra.mxu1 %v2897_v23  ;;  %v85_v2 = vld [vmem:[%s3594_s0] sm:$0xff]  ;;  %v2963_v4 = vld [vmem:[#allocation2 + $0x20c] ss:$16 sps:$4 sm:$0xff]   ;;  %v2961_v7 = vld [vmem:[#allocation2 + $0x208] ss:$16 sps:$4 sm:$0xff]  }
  0x61   :  { %1865 = vmatprep.subr.bf16.mxu0 %v2898_v24  ;;  %2070 = vmatprep.subr.bf16.mxu1 %v2900_v25  ;;  %v2960_v3 = vld [vmem:[#allocation2 + $0x204] ss:$16 sps:$4 sm:$0xff]   ;;  %v94_v5 = vpack.c.bf16 %v85_v2, %v85_v2  ;;  %v2958_v6 = vld [vmem:[#allocation2 + $0x200] ss:$16 sps:$4 sm:$0xff]   ;;  %v2969_v9 = vld [vmem:[#allocation2 + $0x22c] ss:$16 sps:$4 sm:$0xff]  }
  0x62   :  { %v2966_v8 = vld [vmem:[#allocation2 + $0x224] ss:$16 sps:$4 sm:$0xff]   ;;  %v2964_v10 = vld [vmem:[#allocation2 + $0x220] ss:$16 sps:$4 sm:$0xff]   ;;  %v2967_v11 = vld [vmem:[#allocation2 + $0x228] ss:$16 sps:$4 sm:$0xff]  }
  0x63   :  { %v2972_v12 = vld [vmem:[#allocation2 + $0x244] ss:$16 sps:$4 sm:$0xff]   ;;  %v2975_v13 = vld [vmem:[#allocation2 + $0x24c] ss:$16 sps:$4 sm:$0xff]   ;;  %v2970_v14 = vld [vmem:[#allocation2 + $0x240] ss:$16 sps:$4 sm:$0xff]  }
  0x64   :  { %1866 = vmatpush1.bf16.msra.mxu0 %v2902_v26  ;;  %2071 = vmatpush1.bf16.msra.mxu1 %v2903_v27  ;;  %v2973_v15 = vld [vmem:[#allocation2 + $0x248] ss:$16 sps:$4 sm:$0xff]   ;;  %v2978_v16 = vld [vmem:[#allocation2 + $0x264] ss:$16 sps:$4 sm:$0xff]   ;;  %v2981_v17 = vld [vmem:[#allocation2 + $0x26c] ss:$16 sps:$4 sm:$0xff]  }
  0x65   :  { %1867 = vmatprep.subr.bf16.mxu0 %v2904_v28  ;;  %2072 = vmatprep.subr.bf16.mxu1 %v2906_v29  ;;  %v2976_v18 = vld [vmem:[#allocation2 + $0x260] ss:$16 sps:$4 sm:$0xff]   ;;  %v2979_v19 = vld [vmem:[#allocation2 + $0x268] ss:$16 sps:$4 sm:$0xff]   ;;  %v2984_v20 = vld [vmem:[#allocation2 + $0x284] ss:$16 sps:$4 sm:$0xff]  }
  0x66   :  { %v2987_v21 = vld [vmem:[#allocation2 + $0x28c] ss:$16 sps:$4 sm:$0xff]   ;;  %v2982_v22 = vld [vmem:[#allocation2 + $0x280] ss:$16 sps:$4 sm:$0xff]   ;;  %v2985_v23 = vld [vmem:[#allocation2 + $0x288] ss:$16 sps:$4 sm:$0xff]  }
  0x67   :  { %v2990_v24 = vld [vmem:[#allocation2 + $0x2a4] ss:$16 sps:$4 sm:$0xff]   ;;  %v2993_v25 = vld [vmem:[#allocation2 + $0x2ac] ss:$16 sps:$4 sm:$0xff]   ;;  %v2988_v26 = vld [vmem:[#allocation2 + $0x2a0] ss:$16 sps:$4 sm:$0xff]  }
  0x68   :  { %1868 = vmatpush1.bf16.msra.mxu0 %v2908_v30  ;;  %2073 = vmatpush1.bf16.msra.mxu1 %v2909_v31  ;;  %v2991_v27 = vld [vmem:[#allocation2 + $0x2a8] ss:$16 sps:$4 sm:$0xff]   ;;  %v2996_v28 = vld [vmem:[#allocation2 + $0x2c4] ss:$16 sps:$4 sm:$0xff]   ;;  %v2999_v29 = vld [vmem:[#allocation2 + $0x2cc] ss:$16 sps:$4 sm:$0xff]  }
  0x69   :  { %1869 = vmatprep.subr.bf16.mxu0 %v2910_v32  ;;  %2074 = vmatprep.subr.bf16.mxu1 %v2912_v33  ;;  %v88_v30 = vld [vmem:[%s3594_s0 + $0x18] sm:$0xff]  ;;  %v2994_v31 = vld [vmem:[#allocation2 + $0x2c0] ss:$16 sps:$4 sm:$0xff]   ;;  %v3020_v46 = vld [vmem:[#allocation2 + $0x344] ss:$16 sps:$4 sm:$0xff]  }
  0x6a   :  { %v97_v32 = vpack.c.bf16 %v88_v30, %v88_v30  ;;  %v2997_v33 = vld [vmem:[#allocation2 + $0x2c8] ss:$16 sps:$4 sm:$0xff]   ;;  %v3018_v48 = vld [vmem:[#allocation2 + $0x340] ss:$16 sps:$4 sm:$0xff]   ;;  %v3050_v2 = vld [vmem:[#allocation2 + $0x3e4] ss:$16 sps:$4 sm:$0xff]  }
  0x6b   :  { %v3086_v30 = vld [vmem:[#allocation2 + $0x4a4] ss:$16 sps:$4 sm:$0xff]  }
  0x6c   :  { %1870 = vmatpush1.bf16.msra.mxu0 %v2914_v34  ;;  %2075 = vmatpush1.bf16.msra.mxu1 %v2915_v35  ;;  %v3002_v34 = vld [vmem:[#allocation2 + $0x2e4] ss:$16 sps:$4 sm:$0xff]   ;;  %v3005_v35 = vld [vmem:[#allocation2 + $0x2ec] ss:$16 sps:$4 sm:$0xff]  }
  0x6d   :  { %1871 = vmatprep.subr.bf16.mxu0 %v2916_v36  ;;  %2076 = vmatprep.subr.bf16.mxu1 %v2918_v37  ;;  %v3000_v36 = vld [vmem:[#allocation2 + $0x2e0] ss:$16 sps:$4 sm:$0xff]   ;;  %v3003_v37 = vld [vmem:[#allocation2 + $0x2e8] ss:$16 sps:$4 sm:$0xff]  }
  0x70   :  { %1872 = vmatpush1.bf16.msra.mxu0 %v2920_v38  ;;  %2077 = vmatpush1.bf16.msra.mxu1 %v2921_v39  ;;  %v3008_v38 = vld [vmem:[#allocation2 + $0x304] ss:$16 sps:$4 sm:$0xff]   ;;  %v3011_v39 = vld [vmem:[#allocation2 + $0x30c] ss:$16 sps:$4 sm:$0xff]  }
  0x71   :  { %1873 = vmatprep.subr.bf16.mxu0 %v2922_v40  ;;  %2078 = vmatprep.subr.bf16.mxu1 %v2924_v41  ;;  %v3006_v40 = vld [vmem:[#allocation2 + $0x300] ss:$16 sps:$4 sm:$0xff]   ;;  %v3009_v41 = vld [vmem:[#allocation2 + $0x308] ss:$16 sps:$4 sm:$0xff]  }
  0x74   :  { %1874 = vmatpush1.bf16.msra.mxu0 %v2926_v42  ;;  %2079 = vmatpush1.bf16.msra.mxu1 %v2927_v43  ;;  %v3014_v42 = vld [vmem:[#allocation2 + $0x324] ss:$16 sps:$4 sm:$0xff]   ;;  %v3017_v43 = vld [vmem:[#allocation2 + $0x32c] ss:$16 sps:$4 sm:$0xff]  }
  0x75   :  { %1875 = vmatprep.subr.bf16.mxu0 %v2928_v44  ;;  %2080 = vmatprep.subr.bf16.mxu1 %v2930_v45  ;;  %v3012_v44 = vld [vmem:[#allocation2 + $0x320] ss:$16 sps:$4 sm:$0xff]   ;;  %v3015_v45 = vld [vmem:[#allocation2 + $0x328] ss:$16 sps:$4 sm:$0xff]  }
  0x78   :  { %1876 = vmatpush1.bf16.msra.mxu0 %v2932_v47  ;;  %2081 = vmatpush1.bf16.msra.mxu1 %v2933_v49  ;;  %v3023_v47 = vld [vmem:[#allocation2 + $0x34c] ss:$16 sps:$4 sm:$0xff]   ;;  %v3021_v49 = vld [vmem:[#allocation2 + $0x348] ss:$16 sps:$4 sm:$0xff]  }
  0x79   :  { %1877 = vmatprep.subr.bf16.mxu0 %v2934_v50  ;;  %2082 = vmatprep.subr.bf16.mxu1 %v2936_v51  ;;  %v3026_v50 = vld [vmem:[#allocation2 + $0x364] ss:$16 sps:$4 sm:$0xff]   ;;  %v3029_v51 = vld [vmem:[#allocation2 + $0x36c] ss:$16 sps:$4 sm:$0xff]  }
  0x7c   :  { %1878 = vmatpush1.bf16.msra.mxu0 %v2938_v52  ;;  %2083 = vmatpush1.bf16.msra.mxu1 %v2939_v53  ;;  %v3024_v52 = vld [vmem:[#allocation2 + $0x360] ss:$16 sps:$4 sm:$0xff]   ;;  %v3027_v53 = vld [vmem:[#allocation2 + $0x368] ss:$16 sps:$4 sm:$0xff]  }
  0x7d   :  { %1879 = vmatprep.subr.bf16.mxu0 %v2940_v54  ;;  %2084 = vmatprep.subr.bf16.mxu1 %v2942_v55  ;;  %v3032_v54 = vld [vmem:[#allocation2 + $0x384] ss:$16 sps:$4 sm:$0xff]   ;;  %v3035_v55 = vld [vmem:[#allocation2 + $0x38c] ss:$16 sps:$4 sm:$0xff]  }
  0x80   :  { %1880 = vmatpush1.bf16.msra.mxu0 %v2944_v56  ;;  %2085 = vmatpush1.bf16.msra.mxu1 %v2945_v57  ;;  %v3030_v56 = vld [vmem:[#allocation2 + $0x380] ss:$16 sps:$4 sm:$0xff]   ;;  %v3033_v57 = vld [vmem:[#allocation2 + $0x388] ss:$16 sps:$4 sm:$0xff]  }
  0x81   :  { %1881 = vmatprep.subr.bf16.mxu0 %v2946_v58  ;;  %2086 = vmatprep.subr.bf16.mxu1 %v2948_v59  ;;  %v3038_v58 = vld [vmem:[#allocation2 + $0x3a4] ss:$16 sps:$4 sm:$0xff]   ;;  %v3041_v59 = vld [vmem:[#allocation2 + $0x3ac] ss:$16 sps:$4 sm:$0xff]  }
  0x84   :  { %1882 = vmatpush1.bf16.msra.mxu0 %v2950_v60  ;;  %2087 = vmatpush1.bf16.msra.mxu1 %v2951_v61  ;;  %v3036_v60 = vld [vmem:[#allocation2 + $0x3a0] ss:$16 sps:$4 sm:$0xff]   ;;  %v3039_v61 = vld [vmem:[#allocation2 + $0x3a8] ss:$16 sps:$4 sm:$0xff]  }
  0x85   :  { %1883 = vmatprep.subr.bf16.mxu0 %v2952_v62  ;;  %2088 = vmatprep.subr.bf16.mxu1 %v2954_v63  ;;  %v3044_v62 = vld [vmem:[#allocation2 + $0x3c4] ss:$16 sps:$4 sm:$0xff]   ;;  %v3047_v63 = vld [vmem:[#allocation2 + $0x3cc] ss:$16 sps:$4 sm:$0xff]  }
  0x88   :  { %1884 = vmatpush1.bf16.msra.mxu0 %v2956_v0  ;;  %2089 = vmatpush1.bf16.msra.mxu1 %v2957_v1  ;;  %v3042_v0 = vld [vmem:[#allocation2 + $0x3c0] ss:$16 sps:$4 sm:$0xff]   ;;  %v3045_v1 = vld [vmem:[#allocation2 + $0x3c8] ss:$16 sps:$4 sm:$0xff]  }
  0x89   :  { %1894 = vmatprep.subr.bf16.mxu0 %v2960_v3  ;;  %2099 = vmatprep.subr.bf16.mxu1 %v2963_v4  ;;  %v3053_v3 = vld [vmem:[#allocation2 + $0x3ec] ss:$16 sps:$4 sm:$0xff]   ;;  %v3048_v4 = vld [vmem:[#allocation2 + $0x3e0] ss:$16 sps:$4 sm:$0xff]  }
  0x8b   :  { %1886 = vmatmul.mubr.bf16.vlgmr.msra.gmra.mrb[0].mxu0 %v94_v5  ;;  %2091 = vmatmul.mubr.bf16.vlgmr.msra.gmra.mrb[0].mxu1 %v94_v5  ;;  %v3051_v5 = vld [vmem:[#allocation2 + $0x3e8] ss:$16 sps:$4 sm:$0xff]  }
  0x8c   :  { %1895 = vmatpush1.bf16.msra.mxu0 %v2958_v6  ;;  %2100 = vmatpush1.bf16.msra.mxu1 %v2961_v7  ;;  %v3056_v6 = vld [vmem:[#allocation2 + $0x404] ss:$16 sps:$4 sm:$0xff]  }
  0x8d   :  { %1896 = vmatprep.subr.bf16.mxu0 %v2966_v8  ;;  %2101 = vmatprep.subr.bf16.mxu1 %v2969_v9  ;;  %v87_v7 = vld [vmem:[%s3594_s0 + $0x10] sm:$0xff]  ;;  %v3059_v8 = vld [vmem:[#allocation2 + $0x40c] ss:$16 sps:$4 sm:$0xff]  }
  0x8e   :  { %1926 = vmatprep.mubr.bf16.mxu0 %v97_v32  ;;  %2131 = vmatprep.mubr.bf16.mxu1 %v97_v32  ;;  %v3054_v9 = vld [vmem:[#allocation2 + $0x400] ss:$16 sps:$4 sm:$0xff]  }
  0x8f   :  { %v3084_v32 = vld [vmem:[#allocation2 + $0x4a0] ss:$16 sps:$4 sm:$0xff]  }
  0x90   :  { %1897 = vmatpush1.bf16.msra.mxu0 %v2964_v10  ;;  %2102 = vmatpush1.bf16.msra.mxu1 %v2967_v11  ;;  %v3057_v10 = vld [vmem:[#allocation2 + $0x408] ss:$16 sps:$4 sm:$0xff]   ;;  %v96_v11 = vpack.c.bf16 %v87_v7, %v87_v7  ;;  %v3149_v7 = vld [vmem:[#allocation2 + $0x5ec] ss:$16 sps:$4 sm:$0xff]  }
  0x91   :  { %1898 = vmatprep.subr.bf16.mxu0 %v2972_v12  ;;  %2103 = vmatprep.subr.bf16.mxu1 %v2975_v13  ;;  %v3062_v12 = vld [vmem:[#allocation2 + $0x424] ss:$16 sps:$4 sm:$0xff]   ;;  %v3065_v13 = vld [vmem:[#allocation2 + $0x42c] ss:$16 sps:$4 sm:$0xff]  }
  0x94   :  { %1899 = vmatpush1.bf16.msra.mxu0 %v2970_v14  ;;  %2104 = vmatpush1.bf16.msra.mxu1 %v2973_v15  ;;  %v90_v14 = vld [vmem:[%s3594_s0 + $0x28] sm:$0xff] }
  0x95   :  { %1900 = vmatprep.subr.bf16.mxu0 %v2978_v16  ;;  %2105 = vmatprep.subr.bf16.mxu1 %v2981_v17  ;;  %v99_v15 = vpack.c.bf16 %v90_v14, %v90_v14  ;;  %v3060_v16 = vld [vmem:[#allocation2 + $0x420] ss:$16 sps:$4 sm:$0xff]   ;;  %v3063_v17 = vld [vmem:[#allocation2 + $0x428] ss:$16 sps:$4 sm:$0xff]  }
  0x96   :  { %v3153_v14 = vld [vmem:[#allocation2 + $0x608] ss:$16 sps:$4 sm:$0xff]  }
  0x98   :  { %1901 = vmatpush1.bf16.msra.mxu0 %v2976_v18  ;;  %2106 = vmatpush1.bf16.msra.mxu1 %v2979_v19  ;;  %v3068_v18 = vld [vmem:[#allocation2 + $0x444] ss:$16 sps:$4 sm:$0xff]   ;;  %v3071_v19 = vld [vmem:[#allocation2 + $0x44c] ss:$16 sps:$4 sm:$0xff]  }
  0x99   :  { %1902 = vmatprep.subr.bf16.mxu0 %v2984_v20  ;;  %2107 = vmatprep.subr.bf16.mxu1 %v2987_v21  ;;  %v3066_v20 = vld [vmem:[#allocation2 + $0x440] ss:$16 sps:$4 sm:$0xff]   ;;  %v3069_v21 = vld [vmem:[#allocation2 + $0x448] ss:$16 sps:$4 sm:$0xff]  }
  0x9c   :  { %1903 = vmatpush1.bf16.msra.mxu0 %v2982_v22  ;;  %2108 = vmatpush1.bf16.msra.mxu1 %v2985_v23  ;;  %v3074_v22 = vld [vmem:[#allocation2 + $0x464] ss:$16 sps:$4 sm:$0xff]   ;;  %v3077_v23 = vld [vmem:[#allocation2 + $0x46c] ss:$16 sps:$4 sm:$0xff]  }
  0x9d   :  { %1904 = vmatprep.subr.bf16.mxu0 %v2990_v24  ;;  %2109 = vmatprep.subr.bf16.mxu1 %v2993_v25  ;;  %v3072_v24 = vld [vmem:[#allocation2 + $0x460] ss:$16 sps:$4 sm:$0xff]   ;;  %v3075_v25 = vld [vmem:[#allocation2 + $0x468] ss:$16 sps:$4 sm:$0xff]  }
  0xa0   :  { %1905 = vmatpush1.bf16.msra.mxu0 %v2988_v26  ;;  %2110 = vmatpush1.bf16.msra.mxu1 %v2991_v27  ;;  %v3080_v26 = vld [vmem:[#allocation2 + $0x484] ss:$16 sps:$4 sm:$0xff]   ;;  %v3083_v27 = vld [vmem:[#allocation2 + $0x48c] ss:$16 sps:$4 sm:$0xff]  }
  0xa1   :  { %1906 = vmatprep.subr.bf16.mxu0 %v2996_v28  ;;  %2111 = vmatprep.subr.bf16.mxu1 %v2999_v29  ;;  %v3078_v28 = vld [vmem:[#allocation2 + $0x480] ss:$16 sps:$4 sm:$0xff]   ;;  %v3081_v29 = vld [vmem:[#allocation2 + $0x488] ss:$16 sps:$4 sm:$0xff]  }
  0xa4   :  { %1907 = vmatpush1.bf16.msra.mxu0 %v2994_v31  ;;  %2112 = vmatpush1.bf16.msra.mxu1 %v2997_v33  ;;  %v3089_v31 = vld [vmem:[#allocation2 + $0x4ac] ss:$16 sps:$4 sm:$0xff]   ;;  %v3087_v33 = vld [vmem:[#allocation2 + $0x4a8] ss:$16 sps:$4 sm:$0xff]  }
  0xa5   :  { %1908 = vmatprep.subr.bf16.mxu0 %v3002_v34  ;;  %2113 = vmatprep.subr.bf16.mxu1 %v3005_v35  ;;  %v3092_v34 = vld [vmem:[#allocation2 + $0x4c4] ss:$16 sps:$4 sm:$0xff]   ;;  %v3095_v35 = vld [vmem:[#allocation2 + $0x4cc] ss:$16 sps:$4 sm:$0xff]  }
  0xa8   :  { %1909 = vmatpush1.bf16.msra.mxu0 %v3000_v36  ;;  %2114 = vmatpush1.bf16.msra.mxu1 %v3003_v37  ;;  %v3090_v36 = vld [vmem:[#allocation2 + $0x4c0] ss:$16 sps:$4 sm:$0xff]   ;;  %v3093_v37 = vld [vmem:[#allocation2 + $0x4c8] ss:$16 sps:$4 sm:$0xff]  }
  0xa9   :  { %1910 = vmatprep.subr.bf16.mxu0 %v3008_v38  ;;  %2115 = vmatprep.subr.bf16.mxu1 %v3011_v39  ;;  %v3098_v38 = vld [vmem:[#allocation2 + $0x4e4] ss:$16 sps:$4 sm:$0xff]   ;;  %v3101_v39 = vld [vmem:[#allocation2 + $0x4ec] ss:$16 sps:$4 sm:$0xff]  }
  0xac   :  { %1911 = vmatpush1.bf16.msra.mxu0 %v3006_v40  ;;  %2116 = vmatpush1.bf16.msra.mxu1 %v3009_v41  ;;  %v3096_v40 = vld [vmem:[#allocation2 + $0x4e0] ss:$16 sps:$4 sm:$0xff]   ;;  %v3099_v41 = vld [vmem:[#allocation2 + $0x4e8] ss:$16 sps:$4 sm:$0xff]  }
  0xad   :  { %1912 = vmatprep.subr.bf16.mxu0 %v3014_v42  ;;  %2117 = vmatprep.subr.bf16.mxu1 %v3017_v43  ;;  %v3104_v42 = vld [vmem:[#allocation2 + $0x504] ss:$16 sps:$4 sm:$0xff]   ;;  %v3107_v43 = vld [vmem:[#allocation2 + $0x50c] ss:$16 sps:$4 sm:$0xff]  }
  0xb0   :  { %1913 = vmatpush1.bf16.msra.mxu0 %v3012_v44  ;;  %2118 = vmatpush1.bf16.msra.mxu1 %v3015_v45  ;;  %v3102_v44 = vld [vmem:[#allocation2 + $0x500] ss:$16 sps:$4 sm:$0xff]   ;;  %v3105_v45 = vld [vmem:[#allocation2 + $0x508] ss:$16 sps:$4 sm:$0xff]  }
  0xb1   :  { %1914 = vmatprep.subr.bf16.mxu0 %v3020_v46  ;;  %2119 = vmatprep.subr.bf16.mxu1 %v3023_v47  ;;  %v3110_v46 = vld [vmem:[#allocation2 + $0x524] ss:$16 sps:$4 sm:$0xff]   ;;  %v3113_v47 = vld [vmem:[#allocation2 + $0x52c] ss:$16 sps:$4 sm:$0xff]  }
  0xb4   :  { %1915 = vmatpush1.bf16.msra.mxu0 %v3018_v48  ;;  %2120 = vmatpush1.bf16.msra.mxu1 %v3021_v49  ;;  %v3108_v48 = vld [vmem:[#allocation2 + $0x520] ss:$16 sps:$4 sm:$0xff]   ;;  %v3111_v49 = vld [vmem:[#allocation2 + $0x528] ss:$16 sps:$4 sm:$0xff]  }
  0xb5   :  { %1916 = vmatprep.subr.bf16.mxu0 %v3026_v50  ;;  %2121 = vmatprep.subr.bf16.mxu1 %v3029_v51  ;;  %v3116_v50 = vld [vmem:[#allocation2 + $0x544] ss:$16 sps:$4 sm:$0xff]   ;;  %v3119_v51 = vld [vmem:[#allocation2 + $0x54c] ss:$16 sps:$4 sm:$0xff]  }
  0xb8   :  { %1917 = vmatpush1.bf16.msra.mxu0 %v3024_v52  ;;  %2122 = vmatpush1.bf16.msra.mxu1 %v3027_v53  ;;  %v3114_v52 = vld [vmem:[#allocation2 + $0x540] ss:$16 sps:$4 sm:$0xff]   ;;  %v3117_v53 = vld [vmem:[#allocation2 + $0x548] ss:$16 sps:$4 sm:$0xff]  }
  0xb9   :  { %1918 = vmatprep.subr.bf16.mxu0 %v3032_v54  ;;  %2123 = vmatprep.subr.bf16.mxu1 %v3035_v55  ;;  %v3122_v54 = vld [vmem:[#allocation2 + $0x564] ss:$16 sps:$4 sm:$0xff]   ;;  %v3125_v55 = vld [vmem:[#allocation2 + $0x56c] ss:$16 sps:$4 sm:$0xff]  }
  0xbc   :  { %1919 = vmatpush1.bf16.msra.mxu0 %v3030_v56  ;;  %2124 = vmatpush1.bf16.msra.mxu1 %v3033_v57  ;;  %v3120_v56 = vld [vmem:[#allocation2 + $0x560] ss:$16 sps:$4 sm:$0xff]   ;;  %v3123_v57 = vld [vmem:[#allocation2 + $0x568] ss:$16 sps:$4 sm:$0xff]  }
  0xbd   :  { %1920 = vmatprep.subr.bf16.mxu0 %v3038_v58  ;;  %2125 = vmatprep.subr.bf16.mxu1 %v3041_v59  ;;  %v3128_v58 = vld [vmem:[#allocation2 + $0x584] ss:$16 sps:$4 sm:$0xff]   ;;  %v3131_v59 = vld [vmem:[#allocation2 + $0x58c] ss:$16 sps:$4 sm:$0xff]  }
  0xc0   :  { %1921 = vmatpush1.bf16.msra.mxu0 %v3036_v60  ;;  %2126 = vmatpush1.bf16.msra.mxu1 %v3039_v61  ;;  %v3126_v60 = vld [vmem:[#allocation2 + $0x580] ss:$16 sps:$4 sm:$0xff]   ;;  %v3129_v61 = vld [vmem:[#allocation2 + $0x588] ss:$16 sps:$4 sm:$0xff]  }
  0xc1   :  { %1922 = vmatprep.subr.bf16.mxu0 %v3044_v62  ;;  %2127 = vmatprep.subr.bf16.mxu1 %v3047_v63  ;;  %v3134_v62 = vld [vmem:[#allocation2 + $0x5a4] ss:$16 sps:$4 sm:$0xff]   ;;  %v3137_v63 = vld [vmem:[#allocation2 + $0x5ac] ss:$16 sps:$4 sm:$0xff]  }
  0xc4   :  { %1923 = vmatpush1.bf16.msra.mxu0 %v3042_v0  ;;  %2128 = vmatpush1.bf16.msra.mxu1 %v3045_v1  ;;  %v3132_v0 = vld [vmem:[#allocation2 + $0x5a0] ss:$16 sps:$4 sm:$0xff]   ;;  %v3135_v1 = vld [vmem:[#allocation2 + $0x5a8] ss:$16 sps:$4 sm:$0xff]  }
  0xc5   :  { %1924 = vmatprep.subr.bf16.mxu0 %v3050_v2  ;;  %2129 = vmatprep.subr.bf16.mxu1 %v3053_v3  ;;  %v3140_v2 = vld [vmem:[#allocation2 + $0x5c4] ss:$16 sps:$4 sm:$0xff]   ;;  %v3143_v3 = vld [vmem:[#allocation2 + $0x5cc] ss:$16 sps:$4 sm:$0xff]  }
  0xc8   :  { %1925 = vmatpush1.bf16.msra.mxu0 %v3048_v4  ;;  %2130 = vmatpush1.bf16.msra.mxu1 %v3051_v5  ;;  %v3138_v4 = vld [vmem:[#allocation2 + $0x5c0] ss:$16 sps:$4 sm:$0xff]   ;;  %v3141_v5 = vld [vmem:[#allocation2 + $0x5c8] ss:$16 sps:$4 sm:$0xff]  }
  0xc9   :  { %1935 = vmatprep.subr.bf16.mxu0 %v3056_v6  ;;  %2140 = vmatprep.subr.bf16.mxu1 %v3059_v8  ;;  %v3146_v6 = vld [vmem:[#allocation2 + $0x5e4] ss:$16 sps:$4 sm:$0xff]   ;;  %v3144_v8 = vld [vmem:[#allocation2 + $0x5e0] ss:$16 sps:$4 sm:$0xff]  }
  0xcb   :  { %1927 = vmatmul.mubr.bf16.vlgmr.msra.gmra.mrb[0].mxu0 %v96_v11  ;;  %2132 = vmatmul.mubr.bf16.vlgmr.msra.gmra.mrb[0].mxu1 %v96_v11  ;;  %v89_v11 = vld [vmem:[%s3594_s0 + $0x20] sm:$0xff] }
  0xcc   :  { %1936 = vmatpush1.bf16.msra.mxu0 %v3054_v9  ;;  %2141 = vmatpush1.bf16.msra.mxu1 %v3057_v10  ;;  %v3147_v9 = vld [vmem:[#allocation2 + $0x5e8] ss:$16 sps:$4 sm:$0xff]   ;;  %v3152_v10 = vld [vmem:[#allocation2 + $0x604] ss:$16 sps:$4 sm:$0xff]  }
  0xcd   :  { %1937 = vmatprep.subr.bf16.mxu0 %v3062_v12  ;;  %2142 = vmatprep.subr.bf16.mxu1 %v3065_v13  ;;  %v3155_v12 = vld [vmem:[#allocation2 + $0x60c] ss:$16 sps:$4 sm:$0xff]   ;;  %v3150_v13 = vld [vmem:[#allocation2 + $0x600] ss:$16 sps:$4 sm:$0xff]  }
  0xce   :  { %1967 = vmatprep.mubr.bf16.mxu0 %v99_v15  ;;  %2172 = vmatprep.mubr.bf16.mxu1 %v99_v15  ;;  %v98_v15 = vpack.c.bf16 %v89_v11, %v89_v11  ;;  %v3245_v11 = vld [vmem:[#allocation2 + $0x7ec] ss:$16 sps:$4 sm:$0xff]  }
  0xd0   :  { %1938 = vmatpush1.bf16.msra.mxu0 %v3060_v16  ;;  %2143 = vmatpush1.bf16.msra.mxu1 %v3063_v17  ;;  %v92_v16 = vld [vmem:[%s3594_s0 + $0x38] sm:$0xff]  ;;  %v3158_v17 = vld [vmem:[#allocation2 + $0x624] ss:$16 sps:$4 sm:$0xff]  }
  0xd1   :  { %1939 = vmatprep.subr.bf16.mxu0 %v3068_v18  ;;  %2144 = vmatprep.subr.bf16.mxu1 %v3071_v19  ;;  %v3161_v18 = vld [vmem:[#allocation2 + $0x62c] ss:$16 sps:$4 sm:$0xff]   ;;  %v3156_v19 = vld [vmem:[#allocation2 + $0x620] ss:$16 sps:$4 sm:$0xff]  }
  0xd4   :  { %1940 = vmatpush1.bf16.msra.mxu0 %v3066_v20  ;;  %2145 = vmatpush1.bf16.msra.mxu1 %v3069_v21  ;;  %v3159_v20 = vld [vmem:[#allocation2 + $0x628] ss:$16 sps:$4 sm:$0xff]   ;;  %v101_v21 = vpack.c.bf16 %v92_v16, %v92_v16  ;;  %v3251_v16 = vld [vmem:[#allocation2 + $0x80c] ss:$16 sps:$4 sm:$0xff]  }
  0xd5   :  { %1941 = vmatprep.subr.bf16.mxu0 %v3074_v22  ;;  %2146 = vmatprep.subr.bf16.mxu1 %v3077_v23  ;;  %v3164_v22 = vld [vmem:[#allocation2 + $0x644] ss:$16 sps:$4 sm:$0xff]   ;;  %v3167_v23 = vld [vmem:[#allocation2 + $0x64c] ss:$16 sps:$4 sm:$0xff]  }
  0xd8   :  { %1942 = vmatpush1.bf16.msra.mxu0 %v3072_v24  ;;  %2147 = vmatpush1.bf16.msra.mxu1 %v3075_v25  ;;  %v3162_v24 = vld [vmem:[#allocation2 + $0x640] ss:$16 sps:$4 sm:$0xff]   ;;  %v3165_v25 = vld [vmem:[#allocation2 + $0x648] ss:$16 sps:$4 sm:$0xff]  }
  0xd9   :  { %1943 = vmatprep.subr.bf16.mxu0 %v3080_v26  ;;  %2148 = vmatprep.subr.bf16.mxu1 %v3083_v27  ;;  %v3170_v26 = vld [vmem:[#allocation2 + $0x664] ss:$16 sps:$4 sm:$0xff]   ;;  %v3173_v27 = vld [vmem:[#allocation2 + $0x66c] ss:$16 sps:$4 sm:$0xff]  }
  0xdc   :  { %1944 = vmatpush1.bf16.msra.mxu0 %v3078_v28  ;;  %2149 = vmatpush1.bf16.msra.mxu1 %v3081_v29  ;;  %v3168_v28 = vld [vmem:[#allocation2 + $0x660] ss:$16 sps:$4 sm:$0xff]   ;;  %v3171_v29 = vld [vmem:[#allocation2 + $0x668] ss:$16 sps:$4 sm:$0xff]  }
  0xdd   :  { %1945 = vmatprep.subr.bf16.mxu0 %v3086_v30  ;;  %2150 = vmatprep.subr.bf16.mxu1 %v3089_v31  ;;  %v3176_v30 = vld [vmem:[#allocation2 + $0x684] ss:$16 sps:$4 sm:$0xff]   ;;  %v3179_v31 = vld [vmem:[#allocation2 + $0x68c] ss:$16 sps:$4 sm:$0xff]  }
  0xe0   :  { %1946 = vmatpush1.bf16.msra.mxu0 %v3084_v32  ;;  %2151 = vmatpush1.bf16.msra.mxu1 %v3087_v33  ;;  %v3174_v32 = vld [vmem:[#allocation2 + $0x680] ss:$16 sps:$4 sm:$0xff]   ;;  %v3177_v33 = vld [vmem:[#allocation2 + $0x688] ss:$16 sps:$4 sm:$0xff]  }
  0xe1   :  { %1947 = vmatprep.subr.bf16.mxu0 %v3092_v34  ;;  %2152 = vmatprep.subr.bf16.mxu1 %v3095_v35  ;;  %v3182_v34 = vld [vmem:[#allocation2 + $0x6a4] ss:$16 sps:$4 sm:$0xff]   ;;  %v3185_v35 = vld [vmem:[#allocation2 + $0x6ac] ss:$16 sps:$4 sm:$0xff]  }
  0xe4   :  { %1948 = vmatpush1.bf16.msra.mxu0 %v3090_v36  ;;  %2153 = vmatpush1.bf16.msra.mxu1 %v3093_v37  ;;  %v3180_v36 = vld [vmem:[#allocation2 + $0x6a0] ss:$16 sps:$4 sm:$0xff]   ;;  %v3183_v37 = vld [vmem:[#allocation2 + $0x6a8] ss:$16 sps:$4 sm:$0xff]  }
  0xe5   :  { %1949 = vmatprep.subr.bf16.mxu0 %v3098_v38  ;;  %2154 = vmatprep.subr.bf16.mxu1 %v3101_v39  ;;  %v3188_v38 = vld [vmem:[#allocation2 + $0x6c4] ss:$16 sps:$4 sm:$0xff]   ;;  %v3191_v39 = vld [vmem:[#allocation2 + $0x6cc] ss:$16 sps:$4 sm:$0xff]  }
  0xe8   :  { %1950 = vmatpush1.bf16.msra.mxu0 %v3096_v40  ;;  %2155 = vmatpush1.bf16.msra.mxu1 %v3099_v41  ;;  %v3186_v40 = vld [vmem:[#allocation2 + $0x6c0] ss:$16 sps:$4 sm:$0xff]   ;;  %v3189_v41 = vld [vmem:[#allocation2 + $0x6c8] ss:$16 sps:$4 sm:$0xff]  }
  0xe9   :  { %1951 = vmatprep.subr.bf16.mxu0 %v3104_v42  ;;  %2156 = vmatprep.subr.bf16.mxu1 %v3107_v43  ;;  %v3194_v42 = vld [vmem:[#allocation2 + $0x6e4] ss:$16 sps:$4 sm:$0xff]   ;;  %v3197_v43 = vld [vmem:[#allocation2 + $0x6ec] ss:$16 sps:$4 sm:$0xff]  }
  0xec   :  { %1952 = vmatpush1.bf16.msra.mxu0 %v3102_v44  ;;  %2157 = vmatpush1.bf16.msra.mxu1 %v3105_v45  ;;  %v3192_v44 = vld [vmem:[#allocation2 + $0x6e0] ss:$16 sps:$4 sm:$0xff]   ;;  %v3195_v45 = vld [vmem:[#allocation2 + $0x6e8] ss:$16 sps:$4 sm:$0xff]  }
  0xed   :  { %1953 = vmatprep.subr.bf16.mxu0 %v3110_v46  ;;  %2158 = vmatprep.subr.bf16.mxu1 %v3113_v47  ;;  %v3200_v46 = vld [vmem:[#allocation2 + $0x704] ss:$16 sps:$4 sm:$0xff]   ;;  %v3203_v47 = vld [vmem:[#allocation2 + $0x70c] ss:$16 sps:$4 sm:$0xff]  }
  0xf0   :  { %1954 = vmatpush1.bf16.msra.mxu0 %v3108_v48  ;;  %2159 = vmatpush1.bf16.msra.mxu1 %v3111_v49  ;;  %v3198_v48 = vld [vmem:[#allocation2 + $0x700] ss:$16 sps:$4 sm:$0xff]   ;;  %v3201_v49 = vld [vmem:[#allocation2 + $0x708] ss:$16 sps:$4 sm:$0xff]  }
  0xf1   :  { %1955 = vmatprep.subr.bf16.mxu0 %v3116_v50  ;;  %2160 = vmatprep.subr.bf16.mxu1 %v3119_v51  ;;  %v3206_v50 = vld [vmem:[#allocation2 + $0x724] ss:$16 sps:$4 sm:$0xff]   ;;  %v3209_v51 = vld [vmem:[#allocation2 + $0x72c] ss:$16 sps:$4 sm:$0xff]  }
  0xf4   :  { %1956 = vmatpush1.bf16.msra.mxu0 %v3114_v52  ;;  %2161 = vmatpush1.bf16.msra.mxu1 %v3117_v53  ;;  %v3204_v52 = vld [vmem:[#allocation2 + $0x720] ss:$16 sps:$4 sm:$0xff]   ;;  %v3207_v53 = vld [vmem:[#allocation2 + $0x728] ss:$16 sps:$4 sm:$0xff]  }
  0xf5   :  { %1957 = vmatprep.subr.bf16.mxu0 %v3122_v54  ;;  %2162 = vmatprep.subr.bf16.mxu1 %v3125_v55  ;;  %v3212_v54 = vld [vmem:[#allocation2 + $0x744] ss:$16 sps:$4 sm:$0xff]   ;;  %v3215_v55 = vld [vmem:[#allocation2 + $0x74c] ss:$16 sps:$4 sm:$0xff]  }
  0xf8   :  { %1958 = vmatpush1.bf16.msra.mxu0 %v3120_v56  ;;  %2163 = vmatpush1.bf16.msra.mxu1 %v3123_v57  ;;  %v3210_v56 = vld [vmem:[#allocation2 + $0x740] ss:$16 sps:$4 sm:$0xff]   ;;  %v3213_v57 = vld [vmem:[#allocation2 + $0x748] ss:$16 sps:$4 sm:$0xff]  }
  0xf9   :  { %1959 = vmatprep.subr.bf16.mxu0 %v3128_v58  ;;  %2164 = vmatprep.subr.bf16.mxu1 %v3131_v59  ;;  %v3218_v58 = vld [vmem:[#allocation2 + $0x764] ss:$16 sps:$4 sm:$0xff]   ;;  %v3221_v59 = vld [vmem:[#allocation2 + $0x76c] ss:$16 sps:$4 sm:$0xff]  }
  0xfc   :  { %1960 = vmatpush1.bf16.msra.mxu0 %v3126_v60  ;;  %2165 = vmatpush1.bf16.msra.mxu1 %v3129_v61  ;;  %v3216_v60 = vld [vmem:[#allocation2 + $0x760] ss:$16 sps:$4 sm:$0xff]   ;;  %v3219_v61 = vld [vmem:[#allocation2 + $0x768] ss:$16 sps:$4 sm:$0xff]  }
  0xfd   :  { %1961 = vmatprep.subr.bf16.mxu0 %v3134_v62  ;;  %2166 = vmatprep.subr.bf16.mxu1 %v3137_v63  ;;  %v3224_v62 = vld [vmem:[#allocation2 + $0x784] ss:$16 sps:$4 sm:$0xff]   ;;  %v3227_v63 = vld [vmem:[#allocation2 + $0x78c] ss:$16 sps:$4 sm:$0xff]  }
 0x100   :  { %1962 = vmatpush1.bf16.msra.mxu0 %v3132_v0  ;;  %2167 = vmatpush1.bf16.msra.mxu1 %v3135_v1  ;;  %v3222_v0 = vld [vmem:[#allocation2 + $0x780] ss:$16 sps:$4 sm:$0xff]   ;;  %v3225_v1 = vld [vmem:[#allocation2 + $0x788] ss:$16 sps:$4 sm:$0xff]  }
 0x101   :  { %1963 = vmatprep.subr.bf16.mxu0 %v3140_v2  ;;  %2168 = vmatprep.subr.bf16.mxu1 %v3143_v3  ;;  %v3230_v2 = vld [vmem:[#allocation2 + $0x7a4] ss:$16 sps:$4 sm:$0xff]   ;;  %v3233_v3 = vld [vmem:[#allocation2 + $0x7ac] ss:$16 sps:$4 sm:$0xff]  }
 0x104   :  { %1964 = vmatpush1.bf16.msra.mxu0 %v3138_v4  ;;  %2169 = vmatpush1.bf16.msra.mxu1 %v3141_v5  ;;  %v3228_v4 = vld [vmem:[#allocation2 + $0x7a0] ss:$16 sps:$4 sm:$0xff]   ;;  %v3231_v5 = vld [vmem:[#allocation2 + $0x7a8] ss:$16 sps:$4 sm:$0xff]  }
 0x105   :  { %1965 = vmatprep.subr.bf16.mxu0 %v3146_v6  ;;  %2170 = vmatprep.subr.bf16.mxu1 %v3149_v7  ;;  %v3236_v6 = vld [vmem:[#allocation2 + $0x7c4] ss:$16 sps:$4 sm:$0xff]   ;;  %v3239_v7 = vld [vmem:[#allocation2 + $0x7cc] ss:$16 sps:$4 sm:$0xff]  }
 0x108   :  { %1966 = vmatpush1.bf16.msra.mxu0 %v3144_v8  ;;  %2171 = vmatpush1.bf16.msra.mxu1 %v3147_v9  ;;  %v3234_v8 = vld [vmem:[#allocation2 + $0x7c0] ss:$16 sps:$4 sm:$0xff]   ;;  %v3237_v9 = vld [vmem:[#allocation2 + $0x7c8] ss:$16 sps:$4 sm:$0xff]  }
 0x109   :  { %1976 = vmatprep.subr.bf16.mxu0 %v3152_v10  ;;  %2181 = vmatprep.subr.bf16.mxu1 %v3155_v12  ;;  %v3242_v10 = vld [vmem:[#allocation2 + $0x7e4] ss:$16 sps:$4 sm:$0xff]   ;;  %v3240_v12 = vld [vmem:[#allocation2 + $0x7e0] ss:$16 sps:$4 sm:$0xff]  }
 0x10b   :  { %1968 = vmatmul.mubr.bf16.vlgmr.msra.gmra.mrb[0].mxu0 %v98_v15  ;;  %2173 = vmatmul.mubr.bf16.vlgmr.msra.gmra.mrb[0].mxu1 %v98_v15  ;;  %v3248_v15 = vld [vmem:[#allocation2 + $0x804] ss:$16 sps:$4 sm:$0xff]  }
 0x10c   :  { %1977 = vmatpush1.bf16.msra.mxu0 %v3150_v13  ;;  %2182 = vmatpush1.bf16.msra.mxu1 %v3153_v14  ;;  %v3243_v13 = vld [vmem:[#allocation2 + $0x7e8] ss:$16 sps:$4 sm:$0xff]   ;;  %v91_v14 = vld [vmem:[%s3594_s0 + $0x30] sm:$0xff] }
 0x10d   :  { %1978 = vmatprep.subr.bf16.mxu0 %v3158_v17  ;;  %2183 = vmatprep.subr.bf16.mxu1 %v3161_v18  ;;  %v100_v17 = vpack.c.bf16 %v91_v14, %v91_v14  ;;  %v3246_v18 = vld [vmem:[#allocation2 + $0x800] ss:$16 sps:$4 sm:$0xff]  }
 0x10e   :  { %2008 = vmatprep.mubr.bf16.mxu0 %v101_v21  ;;  %2213 = vmatprep.mubr.bf16.mxu1 %v101_v21  ;;  %v3257_v21 = vld [vmem:[#allocation2 + $0x82c] ss:$16 sps:$4 sm:$0xff]  }
 0x110   :  { %1979 = vmatpush1.bf16.msra.mxu0 %v3156_v19  ;;  %2184 = vmatpush1.bf16.msra.mxu1 %v3159_v20  ;;  %v3249_v19 = vld [vmem:[#allocation2 + $0x808] ss:$16 sps:$4 sm:$0xff]   ;;  %v3254_v20 = vld [vmem:[#allocation2 + $0x824] ss:$16 sps:$4 sm:$0xff]  }
 0x111   :  { %1980 = vmatprep.subr.bf16.mxu0 %v3164_v22  ;;  %2185 = vmatprep.subr.bf16.mxu1 %v3167_v23  ;;  %v3252_v22 = vld [vmem:[#allocation2 + $0x820] ss:$16 sps:$4 sm:$0xff]   ;;  %v3255_v23 = vld [vmem:[#allocation2 + $0x828] ss:$16 sps:$4 sm:$0xff]  }
 0x114   :  { %1981 = vmatpush1.bf16.msra.mxu0 %v3162_v24  ;;  %2186 = vmatpush1.bf16.msra.mxu1 %v3165_v25  ;;  %v3260_v24 = vld [vmem:[#allocation2 + $0x844] ss:$16 sps:$4 sm:$0xff]   ;;  %v3263_v25 = vld [vmem:[#allocation2 + $0x84c] ss:$16 sps:$4 sm:$0xff]  }
 0x115   :  { %1982 = vmatprep.subr.bf16.mxu0 %v3170_v26  ;;  %2187 = vmatprep.subr.bf16.mxu1 %v3173_v27  ;;  %v3426_v26 = vmov 0   ;;  %v3258_v27 = vld [vmem:[#allocation2 + $0x840] ss:$16 sps:$4 sm:$0xff]  }
 0x118   :  { %1983 = vmatpush1.bf16.msra.mxu0 %v3168_v28  ;;  %2188 = vmatpush1.bf16.msra.mxu1 %v3171_v29  ;;  %v3261_v28 = vld [vmem:[#allocation2 + $0x848] ss:$16 sps:$4 sm:$0xff]   ;;  %v3266_v29 = vld [vmem:[#allocation2 + $0x864] ss:$16 sps:$4 sm:$0xff]  }
 0x119   :  { %1984 = vmatprep.subr.bf16.mxu0 %v3176_v30  ;;  %2189 = vmatprep.subr.bf16.mxu1 %v3179_v31  ;;  %v3269_v30 = vld [vmem:[#allocation2 + $0x86c] ss:$16 sps:$4 sm:$0xff]   ;;  %v3264_v31 = vld [vmem:[#allocation2 + $0x860] ss:$16 sps:$4 sm:$0xff]  }
 0x11c   :  { %1985 = vmatpush1.bf16.msra.mxu0 %v3174_v32  ;;  %2190 = vmatpush1.bf16.msra.mxu1 %v3177_v33  ;;  %v3267_v32 = vld [vmem:[#allocation2 + $0x868] ss:$16 sps:$4 sm:$0xff]   ;;  %v3272_v33 = vld [vmem:[#allocation2 + $0x884] ss:$16 sps:$4 sm:$0xff]  }
 0x11d   :  { %1986 = vmatprep.subr.bf16.mxu0 %v3182_v34  ;;  %2191 = vmatprep.subr.bf16.mxu1 %v3185_v35  ;;  %v3275_v34 = vld [vmem:[#allocation2 + $0x88c] ss:$16 sps:$4 sm:$0xff]   ;;  %v3270_v35 = vld [vmem:[#allocation2 + $0x880] ss:$16 sps:$4 sm:$0xff]  }
 0x120   :  { %1987 = vmatpush1.bf16.msra.mxu0 %v3180_v36  ;;  %2192 = vmatpush1.bf16.msra.mxu1 %v3183_v37  ;;  %v3273_v36 = vld [vmem:[#allocation2 + $0x888] ss:$16 sps:$4 sm:$0xff]   ;;  %v3278_v37 = vld [vmem:[#allocation2 + $0x8a4] ss:$16 sps:$4 sm:$0xff]  }
 0x121   :  { %1988 = vmatprep.subr.bf16.mxu0 %v3188_v38  ;;  %2193 = vmatprep.subr.bf16.mxu1 %v3191_v39  ;;  %v3281_v38 = vld [vmem:[#allocation2 + $0x8ac] ss:$16 sps:$4 sm:$0xff]   ;;  %v3276_v39 = vld [vmem:[#allocation2 + $0x8a0] ss:$16 sps:$4 sm:$0xff]  }
 0x124   :  { %1989 = vmatpush1.bf16.msra.mxu0 %v3186_v40  ;;  %2194 = vmatpush1.bf16.msra.mxu1 %v3189_v41  ;;  %v3279_v40 = vld [vmem:[#allocation2 + $0x8a8] ss:$16 sps:$4 sm:$0xff]   ;;  %v3284_v41 = vld [vmem:[#allocation2 + $0x8c4] ss:$16 sps:$4 sm:$0xff]  }
 0x125   :  { %1990 = vmatprep.subr.bf16.mxu0 %v3194_v42  ;;  %2195 = vmatprep.subr.bf16.mxu1 %v3197_v43  ;;  %v3287_v42 = vld [vmem:[#allocation2 + $0x8cc] ss:$16 sps:$4 sm:$0xff]   ;;  %v3282_v43 = vld [vmem:[#allocation2 + $0x8c0] ss:$16 sps:$4 sm:$0xff]  }
 0x128   :  { %1991 = vmatpush1.bf16.msra.mxu0 %v3192_v44  ;;  %2196 = vmatpush1.bf16.msra.mxu1 %v3195_v45  ;;  %v3285_v44 = vld [vmem:[#allocation2 + $0x8c8] ss:$16 sps:$4 sm:$0xff]   ;;  %v3290_v45 = vld [vmem:[#allocation2 + $0x8e4] ss:$16 sps:$4 sm:$0xff]  }
 0x129   :  { %1992 = vmatprep.subr.bf16.mxu0 %v3200_v46  ;;  %2197 = vmatprep.subr.bf16.mxu1 %v3203_v47  ;;  %v3293_v46 = vld [vmem:[#allocation2 + $0x8ec] ss:$16 sps:$4 sm:$0xff]   ;;  %v3288_v47 = vld [vmem:[#allocation2 + $0x8e0] ss:$16 sps:$4 sm:$0xff]  }
 0x12c   :  { %1993 = vmatpush1.bf16.msra.mxu0 %v3198_v48  ;;  %2198 = vmatpush1.bf16.msra.mxu1 %v3201_v49  ;;  %v3291_v48 = vld [vmem:[#allocation2 + $0x8e8] ss:$16 sps:$4 sm:$0xff]   ;;  %v93_v49 = vld [vmem:[%s3594_s0 + $0x40] sm:$0xff] }
 0x12d   :  { %1994 = vmatprep.subr.bf16.mxu0 %v3206_v50  ;;  %2199 = vmatprep.subr.bf16.mxu1 %v3209_v51  ;;  %v102_v50 = vpack.c.bf16 %v93_v49, %v93_v49  ;;  %v3294_v51 = vld [vmem:[#allocation6] sm:$0xff]  }
 0x130   :  { %1995 = vmatpush1.bf16.msra.mxu0 %v3204_v52  ;;  %2200 = vmatpush1.bf16.msra.mxu1 %v3207_v53  ;;  %v3427_v52 = vmov 0.0   ;;  %v3295_v53 = vld [vmem:[#allocation6 + $0x8] sm:$0xff]  }
 0x131   :  { %1996 = vmatprep.subr.bf16.mxu0 %v3212_v54  ;;  %2201 = vmatprep.subr.bf16.mxu1 %v3215_v55  ;;  %v3296_v54 = vld [vmem:[#allocation6 + $0x10] sm:$0xff]   ;;  %v3297_v55 = vld [vmem:[#allocation6 + $0x18] sm:$0xff]  }
 0x134   :  { %1997 = vmatpush1.bf16.msra.mxu0 %v3210_v56  ;;  %2202 = vmatpush1.bf16.msra.mxu1 %v3213_v57  ;;  %v3298_v56 = vld [vmem:[#allocation6 + $0x20] sm:$0xff]   ;;  %v3299_v57 = vld [vmem:[#allocation6 + $0x28] sm:$0xff]  }
 0x135   :  { %1998 = vmatprep.subr.bf16.mxu0 %v3218_v58  ;;  %2203 = vmatprep.subr.bf16.mxu1 %v3221_v59  ;;  %v3300_v58 = vld [vmem:[#allocation6 + $0x30] sm:$0xff]   ;;  %v3301_v59 = vld [vmem:[#allocation6 + $0x38] sm:$0xff]  }
 0x138   :  { %1999 = vmatpush1.bf16.msra.mxu0 %v3216_v60  ;;  %2204 = vmatpush1.bf16.msra.mxu1 %v3219_v61  ;;  %v393_v60 = vlaneseq }
 0x139   :  { %2000 = vmatprep.subr.bf16.mxu0 %v3224_v62  ;;  %2205 = vmatprep.subr.bf16.mxu1 %v3227_v63  ;;  %v391_v63 = vld [vmem:[#allocation4] sm:$0xf] }
 0x13a   :  { %v394_v61 = vshrl.u32 %v393_v60, 7 }
 0x13c   :  { %2001 = vmatpush1.bf16.msra.mxu0 %v3222_v0  ;;  %2206 = vmatpush1.bf16.msra.mxu1 %v3225_v1  ;;  %v395_v62 = vsub.s32 0, %v394_v61  ;;  %v399_v0 = vsub.s32 1, %v394_v61 }
 0x13d   :  { %2002 = vmatprep.subr.bf16.mxu0 %v3230_v2  ;;  %2207 = vmatprep.subr.bf16.mxu1 %v3233_v3 }
 0x13e   :  { %v396_v1 = vrot.slane %v391_v63, %v395_v62  ;;  %v400_v2 = vrot.slane %v391_v63, %v399_v0 }
 0x140   :  { %2003 = vmatpush1.bf16.msra.mxu0 %v3228_v4  ;;  %2208 = vmatpush1.bf16.msra.mxu1 %v3231_v5  ;;  %v407_v5 = vsub.s32 3, %v394_v61 }
 0x141   :  { %2004 = vmatprep.subr.bf16.mxu0 %v3236_v6  ;;  %2209 = vmatprep.subr.bf16.mxu1 %v3239_v7 }
 0x144   :  { %2005 = vmatpush1.bf16.msra.mxu0 %v3234_v8  ;;  %2210 = vmatpush1.bf16.msra.mxu1 %v3237_v9 }
 0x145   :  { %2006 = vmatprep.subr.bf16.mxu0 %v3242_v10  ;;  %2211 = vmatprep.subr.bf16.mxu1 %v3245_v11 }
 0x148   :  { %2007 = vmatpush1.bf16.msra.mxu0 %v3240_v12  ;;  %2212 = vmatpush1.bf16.msra.mxu1 %v3243_v13 }
 0x149   :  { %2017 = vmatprep.subr.bf16.mxu0 %v3248_v15  ;;  %2222 = vmatprep.subr.bf16.mxu1 %v3251_v16  ;;  %v408_v16 = vrot.slane %v391_v63, %v407_v5 }
 0x14b   :  { %2009 = vmatmul.mubr.bf16.vlgmr.msra.gmra.mrb[0].mxu0 %v100_v17  ;;  %2214 = vmatmul.mubr.bf16.vlgmr.msra.gmra.mrb[0].mxu1 %v100_v17  ;;  %v403_v17 = vsub.s32 2, %v394_v61  ;;  %v2403_v61 = vand.u32 127, %v393_v60 }
 0x14c   :  { %2018 = vmatpush1.bf16.msra.mxu0 %v3246_v18  ;;  %2223 = vmatpush1.bf16.msra.mxu1 %v3249_v19 }
 0x14d   :  { %2019 = vmatprep.subr.bf16.mxu0 %v3254_v20  ;;  %2224 = vmatprep.subr.bf16.mxu1 %v3257_v21  ;;  %v404_v19 = vrot.slane %v391_v63, %v403_v17  ;;  %vm2404_vm5 = vcmp.eq.s32.totalorder %v2403_v61, 6  ;;  %vm2455_vm6 = vcmp.eq.s32.totalorder %v2403_v61, 0  ;;  %vm2457_vm7 = vcmp.eq.s32.totalorder %v2403_v61, 1 }
 0x14e   :  { %2049 = vmatprep.mubr.bf16.mxu0 %v3426_v26  ;;  %2254 = vmatprep.mubr.bf16.mxu1 %v3426_v26  ;;  %vm2460_vm8 = vcmp.eq.s32.totalorder %v2403_v61, 2  ;;  %vm2463_vm9 = vcmp.eq.s32.totalorder %v2403_v61, 3 }
 0x150   :  { %2020 = vmatpush1.bf16.msra.mxu0 %v3252_v22  ;;  %2225 = vmatpush1.bf16.msra.mxu1 %v3255_v23 }
 0x151   :  { %2021 = vmatprep.subr.bf16.mxu0 %v3260_v24  ;;  %2226 = vmatprep.subr.bf16.mxu1 %v3263_v25 }
 0x154   :  { %2022 = vmatpush1.bf16.msra.mxu0 %v3258_v27  ;;  %2227 = vmatpush1.bf16.msra.mxu1 %v3261_v28  ;;  %v2282_v28 = vld [vmem:[%s3595_s1] sm:$0xff] }
 0x155   :  { %2023 = vmatprep.subr.bf16.mxu0 %v3266_v29  ;;  %2228 = vmatprep.subr.bf16.mxu1 %v3269_v30 }
 0x158   :  { %2024 = vmatpush1.bf16.msra.mxu0 %v3264_v31  ;;  %2229 = vmatpush1.bf16.msra.mxu1 %v3267_v32 }
 0x159   :  { %2025 = vmatprep.subr.bf16.mxu0 %v3272_v33  ;;  %2230 = vmatprep.subr.bf16.mxu1 %v3275_v34 }
 0x15c   :  { %2026 = vmatpush1.bf16.msra.mxu0 %v3270_v35  ;;  %2231 = vmatpush1.bf16.msra.mxu1 %v3273_v36 }
 0x15d   :  { %2027 = vmatprep.subr.bf16.mxu0 %v3278_v37  ;;  %2232 = vmatprep.subr.bf16.mxu1 %v3281_v38 }
 0x160   :  { %2028 = vmatpush1.bf16.msra.mxu0 %v3276_v39  ;;  %2233 = vmatpush1.bf16.msra.mxu1 %v3279_v40  ;;  %v2777_v39 = vld [vmem:[#allocation7] ss:$0 sm:$0xff] }
 0x161   :  { %2029 = vmatprep.subr.bf16.mxu0 %v3284_v41  ;;  %2234 = vmatprep.subr.bf16.mxu1 %v3287_v42  ;;  %v2408_v41 = vld [vmem:[%s3600_s6] sm:$0xff] }
 0x162   :  { %vm2409_vm3 = vcmp.eq.f32.partialorder %v2408_v41, 0.0 }
 0x164   :  { %2030 = vmatpush1.bf16.msra.mxu0 %v3282_v43  ;;  %2235 = vmatpush1.bf16.msra.mxu1 %v3285_v44 }
 0x165   :  { %2031 = vmatprep.subr.bf16.mxu0 %v3290_v45  ;;  %2236 = vmatprep.subr.bf16.mxu1 %v3293_v46 }
 0x168   :  { %2032 = vmatpush1.bf16.msra.mxu0 %v3288_v47  ;;  %2237 = vmatpush1.bf16.msra.mxu1 %v3291_v48 }
 0x169   :  { %2795 = vmatprep.subr.bf16.mxu0 %v3427_v52 }
 0x16b   :  { %2050 = vmatmul.mubr.bf16.vlgmr.msra.gmra.mrb[0].mxu0 %v102_v50  ;;  %2255 = vmatmul.mubr.bf16.vlgmr.msra.gmra.mrb[0].mxu1 %v102_v50 }
 0x16c   :  { %2796 = vmatpush3.bf16.msra.mxu0 %v3294_v51  ;;  %2811 = vmatprep.mubr.msk.bf16.mxu0 %vm3428_vm0, %v3427_v52 }
 0x16d   :  { %2797 = vmatprep.subr.bf16.mxu0 %v3427_v52 }
 0x170   :  { %2798 = vmatpush3.bf16.msra.mxu0 %v3295_v53 }
 0x171   :  { %2799 = vmatprep.subr.bf16.mxu0 %v3427_v52 }
 0x174   :  { %2800 = vmatpush3.bf16.msra.mxu0 %v3296_v54 }
 0x175   :  { %2801 = vmatprep.subr.bf16.mxu0 %v3427_v52 }
 0x178   :  { %2802 = vmatpush3.bf16.msra.mxu0 %v3297_v55 }
 0x179   :  { %2803 = vmatprep.subr.bf16.mxu0 %v3427_v52 }
 0x17c   :  { %2804 = vmatpush3.bf16.msra.mxu0 %v3298_v56 }
 0x17d   :  { %2805 = vmatprep.subr.bf16.mxu0 %v3427_v52 }
 0x180   :  { %2806 = vmatpush3.bf16.msra.mxu0 %v3299_v57  ;;  %v2425_v57 = vld [vmem:[%s3601_s7] sm:$0xff] }
 0x181   :  { %2807 = vmatprep.subr.bf16.mxu0 %v3427_v52 }
 0x184   :  { %2808 = vmatpush3.bf16.msra.mxu0 %v3300_v58 }
 0x185   :  { %2809 = vmatprep.subr.bf16.mxu0 %v3427_v52 }
 0x188   :  { %2810 = vmatpush3.bf16.msra.mxu0 %v3301_v59 }
 0x23e   :  { %v2051_v3 = vpop.f32.mrb[0].mxu0  ;;  %v2256_v4 = vpop.f32.mrb[0].mxu1 }
 0x23f   :  { %v2815_v6 = vadd.f32 %v2051_v3, %v396_v1  ;;  %v2053_v7 = vpop.f32.mrb[1].mxu0  ;;  %v2258_v8 = vpop.f32.mrb[1].mxu1  ;;  %v2817_v21 = vadd.f32 %v2256_v4, %v404_v19 }
 0x240   :  { %v2816_v9 = vadd.f32 %v2053_v7, %v400_v2  ;;  %v2055_v10 = vpop.f32.mrb[2].mxu0  ;;  %v2260_v11 = vpop.f32.mrb[2].mxu1  ;;  %v2818_v18 = vadd.f32 %v2258_v8, %v408_v16 }
 0x241   :  { %v2774_v12 = vmul.f32 -1.442695, %v2815_v6  ;;  %v2056_v13 = vpop.f32.mrb[3].mxu0  ;;  %v2261_v14 = vpop.f32.mrb[3].mxu1 }
 0x242   :  { %v2775_v15 = vmul.f32 -1.442695, %v2816_v9  ;;  %v2776_v20 = vmul.f32 -1.442695, %v2818_v18 }
 0x243   :  { %3302 = vpow2.f32 %v2774_v12 }
 0x244   :  { %3304 = vpow2.f32 %v2775_v15 }
 0x245   :  { %3306 = vpow2.f32 %v2776_v20 }
 0x246   :  { %3308 = vtanh.f32 %v2817_v21 }
 0x24d   :  { %v3303_v22 = vpop.eup %3302 }
 0x24e   :  { %v3305_v23 = vpop.eup %3304  ;;  %v2266_v24 = vadd.f32 1.0, %v3303_v22 }
 0x24f   :  { %v2272_v25 = vadd.f32 1.0, %v3305_v23  ;;  %v3307_v26 = vpop.eup %3306 }
 0x250   :  { %3310 = vrcp.f32 %v2266_v24  ;;  %v3309_v27 = vpop.eup %3308  ;;  %v2279_v32 = vadd.f32 1.0, %v3307_v26 }
 0x251   :  { %3312 = vrcp.f32 %v2272_v25 }
 0x252   :  { %3314 = vrcp.f32 %v2279_v32 }
 0x25a   :  { %v3311_v29 = vpop.eup %3310 }
 0x25b   :  { %v3313_v30 = vpop.eup %3312  ;;  %v2284_v31 = vmul.f32 %v3311_v29, %v3309_v27 }
 0x25c   :  { %v2283_v33 = vmul.f32 %v3313_v30, %v2282_v28  ;;  %v3315_v35 = vpop.eup %3314 }
 0x25e   :  { %v2285_v34 = vadd.f32 %v2284_v31, %v2283_v33 }
 0x260   :  { %3316 = vtanh.f32 %v2285_v34  ;;  %2289 = vst [vmem:[%s3605_s11] sm:$0xff] %v2285_v34 }
 0x26a   :  { %v3317_v36 = vpop.eup %3316 }
 0x26b   :  { %v2287_v37 = vmul.f32 %v3317_v36, %v3315_v35 }
 0x26d   :  { %2288 = vst [vmem:[%s3604_s10] sm:$0xff] %v2287_v37  ;;  %v2290_v38 = vpack.c.bf16 %v2287_v37, %v2287_v37 }
 0x26f   :  { %2812 = vmatmul.mubr.bf16.vlgmr.msra.gmra.mrb[4].mxu0 %v2290_v38 }
 0x342   :  { %v2396_v40 = vpop.f32.mrb[4].mxu0 }
 0x343   :  { %v2397_v42 = vadd.f32 %v2777_v39, %v2396_v40  ;;  %v2813_v43 = vpop.f32.mrb[5].mxu0 }
 0x344   :  { %v2399_v44 = vpop.f32.mrb[6].mxu0 }
 0x345   :  { %v2410_v45 = vadd.f32 %v2408_v41, %v2397_v42  ;;  %v2814_v46 = vpop.f32.mrb[7].mxu0  ;;  %v2405_v13 = vsel %vm2404_vm5, %v2397_v42, 0.0 }
 0x347   :  { %2411 = vmax.xlane.f32.xlu0 %v2410_v45 }
 0x3d4   :  { %v2412_v47 = vpop.xlane.xlu0 %2411 }
 0x3d5   :  { %v2413_v48 = vsub.f32 %v2410_v45, %v2412_v47 }
 0x3d7   :  { %v2414_v49 = vmul.f32 1.442695, %v2413_v48 }
 0x3d9   :  { %3318 = vpow2.f32 %v2414_v49 }
 0x3e3   :  { %v3319_v50 = vpop.eup %3318 }
 0x3e4   :  { %2416 = vadd.xlane.f32.xlu0 %v3319_v50 }
 0x471   :  { %v2417_v51 = vpop.xlane.xlu0 %2416 }
 0x472   :  { %3320 = vlog2.f32 %v2417_v51 }
 0x473   :  { %3322 = vrcp.f32 %v2417_v51 }
 0x47c   :  { %v3321_v52 = vpop.eup %3320 }
 0x47d   :  { %v3323_v53 = vpop.eup %3322  ;;  %v2419_v54 = vmul.f32 0.6931472, %v3321_v52 }
 0x47e   :  { %v2423_v55 = vmul.f32 %v3323_v53, %v3319_v50 }
 0x47f   :  { %v2420_v56 = vadd.f32 %v2419_v54, %v2412_v47 }
 0x480   :  { %2424 = vst [vmem:[%s3602_s8] sm:$0xff] %v2423_v55 }
 0x481   :  { %v2421_v58 = vsub.f32 %v2410_v45, %v2420_v56 }
 0x483   :  { %v2426_v59 = vadd.f32 %v2425_v57, %v2421_v58  ;;  %v2449_v6 = vmul.f32 %v2423_v55, %v2421_v58 }
 0x485   :  { %2427 = vmax.xlane.f32.xlu1 %v2426_v59  ;;  %v2450_v7 = vsel %vm2409_vm3, %v2449_v6, 0.0 }
 0x512   :  { %v2428_v62 = vpop.xlane.xlu1 %2427 }
 0x513   :  { %vm2429_vm1 = vcmp.eq.f32.partialorder %v2426_v59, %v2428_v62 }
 0x514   :  { %v2430_v63 = vsel %vm2429_vm1, %v2403_v61, 128 }
 0x515   :  { %v2432_v0 = vshra.s32 %v2430_v63, 16  ;;  %v2431_v2 = vand.u32 65535, %v2430_v63 }
 0x517   :  { %v2434_v1 = vcvt.s32.f32 %v2432_v0  ;;  %v2433_v4 = vcvt.s32.f32 %v2431_v2 }
 0x519   :  { %2435 = vmin.xlane.f32.xlu1 %v2434_v1 }
 0x5a6   :  { %v2436_v3 = vpop.xlane.xlu1 %2435 }
 0x5a7   :  { %vm2437_vm2 = vcmp.eq.f32.partialorder %v2434_v1, %v2436_v3  ;;  %v2442_v8 = vcvt.f32.s32 %v2436_v3 }
 0x5a8   :  { %v2438_v5 = vsel %vm2437_vm2, %v2433_v4, inf }
 0x5a9   :  { %2439 = vmin.xlane.f32.xlu0 %v2438_v5  ;;  %v2443_v10 = vshll.u32 %v2442_v8, 16 }
 0x5ad   :  { %2451 = vadd.xlane.f32.xlu0 %v2450_v7 }
 0x636   :  { %v2440_v9 = vpop.xlane.xlu0 %2439 }
 0x637   :  { %v2441_v60 = vcvt.f32.s32 %v2440_v9 }
 0x639   :  { %v2444_v11 = vadd.s32 %v2443_v10, %v2441_v60 }
 0x63a   :  { %v2452_v14 = vpop.xlane.xlu0 %2451 }
 0x63b   :  { %vm2445_vm4 = vcmp.eq.s32.totalorder %v2403_v61, %v2444_v11  ;;  %v2454_v15 = vcvt.s32.f32 %v2444_v11  ;;  %v2453_v16 = vsub.f32 0.0, %v2452_v14 }
 0x63c   :  { %v2446_v12 = vsel %vm2445_vm4, %v2421_v58, 0.0 }
 0x63d   :  { %2447 = vadd.xlane.f32.xlu1 %v2446_v12  ;;  %v2456_v18 = vsel %vm2455_vm6, %v2454_v15, 0.0  ;;  %v2461_v21 = vsel %vm2460_vm8, %v2453_v16, 0.0 }
 0x641   :  { %2406 = vadd.xlane.f32.xlu1 %v2405_v13 }
 0x6ca   :  { %v2448_v17 = vpop.xlane.xlu1 %2447 }
 0x6cb   :  { %v2458_v19 = vsel %vm2457_vm7, %v2448_v17, 0.0 }
 0x6cc   :  { %v2459_v20 = vadd.f32 %v2458_v19, %v2456_v18 }
 0x6ce   :  { %v2462_v22 = vadd.f32 %v2461_v21, %v2459_v20  ;;  %v2407_v23 = vpop.xlane.xlu1 %2406 }
 0x6cf   :  { %v2464_v24 = vsel %vm2463_vm9, %v2407_v23, 0.0 }
 0x6d0   :  { %v2465_v25 = vadd.f32 %v2464_v24, %v2462_v22 }
 0x6d2   :  { %2466 = vst [vmem:[%s3603_s9] sm:$0xff] %v2465_v25 }
 0x6d3   :  { %2483 = vsyncpa [#allocation3], 1 }
 0x6d4   :  { %2484 = vsyncpa [#allocation5], 1 }
 0x6d5   :  { %2485 = vsyncpa [#allocation8], 1 }

</bundles_post_ra>
